<compile_context>
chip_gen: v7x
topology: tpu7x:2x2x1
jax: 0.10.0
libtpu: 0.0.40
codegen_flags: <defaults>
</compile_context>

<pallas_src>
import functools

import jax
import jax.numpy as jnp
from jax.experimental import pallas as pl
from jax.experimental.pallas import tpu as pltpu


def _pick_row_block(total_rows, preferred=128):
    """Largest-of-one-choice row block that tiles `total_rows` (8|block or full)."""
    return preferred if total_rows % preferred == 0 else total_rows


# --------------------------------------------------------------------------
# Layer 0 + 1: im2col matmul + bias + fused ReLU
# --------------------------------------------------------------------------
def _matmul_bias_relu_kernel(p_ref, w_ref, b_ref, o_ref):
    # p_ref: (1, BM, K)   w_ref: (K, Cout)   b_ref: (1, Cout)   o_ref: (1, BM, Cout)
    acc = jnp.dot(p_ref[0], w_ref[...], preferred_element_type=jnp.float32)
    acc = acc + b_ref[...]
    acc = jnp.maximum(acc, 0.0)
    o_ref[0, :, :] = acc.astype(o_ref.dtype)


def conv1_relu_im2col(x_nhwc, w_oihw, bias):
    """3x3 / stride 1 / pad 1 conv with fused ReLU for small Cin (im2col, K=9*Cin)."""
    N, H, W, Cin = x_nhwc.shape
    Cout = w_oihw.shape[0]
    K = 9 * Cin

    # wrapper-side im2col (cheap: Cin=3) -> (N, H*W, 27), tap order (ky, kx, ci)
    xp = jnp.pad(x_nhwc, ((0, 0), (1, 1), (1, 1), (0, 0)))
    taps = [xp[:, ky:ky + H, kx:kx + W, :] for ky in range(3) for kx in range(3)]
    patches = jnp.concatenate(taps, axis=-1).reshape(N, H * W, K)

    # OIHW -> (ky, kx, ci, co) -> (27, Cout), matching the patch channel order
    w_flat = jnp.transpose(w_oihw, (2, 3, 1, 0)).reshape(K, Cout)
    b2 = bias.reshape(1, Cout)

    BM = _pick_row_block(H * W, 128)
    grid = (N, (H * W) // BM)

    out_flat = pl.pallas_call(
        _matmul_bias_relu_kernel,
        out_shape=jax.ShapeDtypeStruct((N, H * W, Cout), x_nhwc.dtype),
        grid_spec=pltpu.PrefetchScalarGridSpec(
            num_scalar_prefetch=0,
            grid=grid,
            in_specs=[
                pl.BlockSpec((1, BM, K), lambda n, m: (n, m, 0)),
                pl.BlockSpec((K, Cout), lambda n, m: (0, 0)),
                pl.BlockSpec((1, Cout), lambda n, m: (0, 0)),
            ],
            out_specs=pl.BlockSpec((1, BM, Cout), lambda n, m: (n, m, 0)),
        ),
        compiler_params=pltpu.CompilerParams(
            dimension_semantics=("parallel", "parallel")),
    )(patches, w_flat, b2)

    return out_flat.reshape(N, H, W, Cout)          # NHWC


# --------------------------------------------------------------------------
# Layer 2: 3x3 conv via flat shifted-row 2-D matmuls (no per-tap reshape)
# --------------------------------------------------------------------------
def _conv3x3_flat_kernel(x_ref, w_ref, b_ref, o_ref, acc_ref, *, Wp, L):
    # x_ref : (1, R, Cin)  whole flat padded image (resident across strips)
    # w_ref : (9, Cin, Cout)   b_ref: (1, Cout)
    # o_ref : (1, L, Cout)     acc_ref: (L, Cout) f32 VMEM scratch
    base = pl.multiple_of(pl.program_id(1) * L, 8)   # strip start (8-aligned)
    t = 0
    for ky in range(3):
        for kx in range(3):
            off = ky * Wp + kx                       # static tap offset in flat rows
            patch = x_ref[0, pl.ds(base + off, L), :]        # (L, Cin), 2-D slab
            contrib = jnp.dot(patch, w_ref[t],
                              preferred_element_type=jnp.float32)
            if t == 0:
                acc_ref[...] = contrib
            else:
                acc_ref[...] += contrib
            t += 1
    o_ref[0, :, :] = (acc_ref[...] + b_ref[...]).astype(o_ref.dtype)


def conv3x3_same(x_nhwc, w_oihw, bias, *, strip=None):
    """3x3 / stride 1 / pad 1 conv (no activation).  x: (N,H,W,Cin) NHWC."""
    N, H, W, Cin = x_nhwc.shape
    Cout = w_oihw.shape[0]
    Wp = W + 2                                       # padded width = flat row stride
    if strip is None:
        strip = 8 if H % 8 == 0 else H               # output rows per grid step
    L = strip * Wp                                   # flat rows per grid step
    R = (H + 3) * Wp                                 # flat rows of padded input

    # pad H by (1, 2): the extra bottom row only feeds discarded junk columns.
    xp = jnp.pad(x_nhwc, ((0, 0), (1, 2), (1, 1), (0, 0))).reshape(N, R, Cin)
    # OIHW -> (ky, kx, ci, co) -> (9, Cin, Cout), tap index t = 3*ky + kx
    w_taps = jnp.transpose(w_oihw, (2, 3, 1, 0)).reshape(9, Cin, Cout)
    b2 = bias.reshape(1, Cout)

    kernel = functools.partial(_conv3x3_flat_kernel, Wp=Wp, L=L)

    out_flat = pl.pallas_call(
        kernel,
        out_shape=jax.ShapeDtypeStruct((N, H * Wp, Cout), x_nhwc.dtype),
        grid_spec=pltpu.PrefetchScalarGridSpec(
            num_scalar_prefetch=0,
            grid=(N, H // strip),
            in_specs=[
                pl.BlockSpec((1, R, Cin), lambda n, s: (n, 0, 0)),   # resident per n
                pl.BlockSpec((9, Cin, Cout), lambda n, s: (0, 0, 0)),
                pl.BlockSpec((1, Cout), lambda n, s: (0, 0)),
            ],
            out_specs=pl.BlockSpec((1, L, Cout), lambda n, s: (n, s, 0)),
            scratch_shapes=[pltpu.VMEM((L, Cout), jnp.float32)],
        ),
        compiler_params=pltpu.CompilerParams(
            dimension_semantics=("parallel", "parallel")),
    )(xp, w_taps, b2)

    # drop the 2 junk columns per row; fuses with the exit transpose under jit
    return out_flat.reshape(N, H, Wp, Cout)[:, :, :W, :]     # NHWC


# --------------------------------------------------------------------------
# FeatureExtractor.forward
# --------------------------------------------------------------------------
def feature_extractor_forward(x_nchw, params):
    """Returns [layer0_out, layer1_out, layer2_out] exactly like the PyTorch
    module (inplace ReLU => out[0] and out[1] carry the same values)."""
    w1, b1, w2, b2 = params
    x_nhwc = jnp.transpose(x_nchw, (0, 2, 3, 1))     # single entry relayout
    r1 = conv1_relu_im2col(x_nhwc, w1, b1)           # features[0] + fused features[1]
    c2 = conv3x3_same(r1, w2, b2)                    # features[2]
    r1_nchw = jnp.transpose(r1, (0, 3, 1, 2))        # exit relayouts (PyTorch layout)
    c2_nchw = jnp.transpose(c2, (0, 3, 1, 2))
    return [r1_nchw, r1_nchw, c2_nchw]


# --------------------------------------------------------------------------
# Pure-JAX reference for a correctness sanity check
# --------------------------------------------------------------------------
def _conv_ref(x, w, b):
    y = jax.lax.conv_general_dilated(
        x, w, window_strides=(1, 1), padding="SAME",
        dimension_numbers=("NCHW", "OIHW", "NCHW"),
    )
    return y + b[None, :, None, None]


if __name__ == "__main__":
    key = jax.random.PRNGKey(0)
    kx, kw1, kb1, kw2, kb2 = jax.random.split(key, 5)

    # small shapes consistent with VGG features[0:3]
    N, Cin, H, W = 2, 3, 16, 16
    Cmid = 64

    x = jax.random.normal(kx, (N, Cin, H, W), dtype=jnp.float32)

    # deterministic synthetic weights (VGG-shaped, not a checkpoint load)
    w1 = 0.1 * jax.random.normal(kw1, (Cmid, Cin, 3, 3), dtype=jnp.float32)
    b1 = 0.1 * jax.random.normal(kb1, (Cmid,), dtype=jnp.float32)
    w2 = 0.05 * jax.random.normal(kw2, (Cmid, Cmid, 3, 3), dtype=jnp.float32)
    b2 = 0.05 * jax.random.normal(kb2, (Cmid,), dtype=jnp.float32)
    params = (w1, b1, w2, b2)

    fwd = jax.jit(feature_extractor_forward)
    outs = fwd(x, params)
    outs = [jax.block_until_ready(o) for o in outs]

    # reference check
    c1_ref = _conv_ref(x, w1, b1)
    r1_ref = jnp.maximum(c1_ref, 0.0)
    c2_ref = _conv_ref(r1_ref, w2, b2)
    refs = [r1_ref, r1_ref, c2_ref]

    for got, ref in zip(outs, refs):
        assert got.shape == ref.shape and got.dtype == ref.dtype
        if not jnp.allclose(got, ref, atol=1e-4, rtol=1e-4):
            raise AssertionError("Pallas output mismatch vs JAX reference")

    print("KERNEL_OK")
</pallas_src>

<mosaic_0001>
module attributes {stable_mosaic.version = 11 : i64} {
  func.func @_matmul_bias_relu_kernel(%arg0: i32, %arg1: i32, %arg2: memref<1x128x27xf32, #tpu.memory_space<vmem>>, %arg3: memref<27x64xf32, #tpu.memory_space<vmem>>, %arg4: memref<1x64xf32, #tpu.memory_space<vmem>>, %arg5: memref<1x128x64xf32, #tpu.memory_space<vmem>>) attributes {dimension_semantics = [#tpu.dimension_semantics<parallel>, #tpu.dimension_semantics<parallel>], iteration_bounds = array<i64: 2, 2>, scalar_prefetch = 0 : i64, scratch_operands = 0 : i64, tpu.core_type = #tpu.core_type<tc>, window_params = [{transform_indices = @transform_0, window_bounds = array<i64: 1, 128, 27>}, {pipeline_mode = #tpu.pipeline_mode<synchronous>, transform_indices = @transform_1, window_bounds = array<i64: 27, 64>}, {pipeline_mode = #tpu.pipeline_mode<synchronous>, transform_indices = @transform_2, window_bounds = array<i64: 1, 64>}, {transform_indices = @transform_3, window_bounds = array<i64: 1, 128, 64>}]} {
    %c0 = arith.constant 0 : index
    %c0_0 = arith.constant 0 : index
    %c0_1 = arith.constant 0 : index
    %0 = vector.load %arg2[%c0, %c0_0, %c0_1] : memref<1x128x27xf32, #tpu.memory_space<vmem>>, vector<1x128x27xf32>
    %1 = vector.shape_cast %0 : vector<1x128x27xf32> to vector<128x27xf32>
    %c0_2 = arith.constant 0 : index
    %c0_3 = arith.constant 0 : index
    %2 = vector.load %arg3[%c0_2, %c0_3] : memref<27x64xf32, #tpu.memory_space<vmem>>, vector<27x64xf32>
    %cst = arith.constant dense<0.000000e+00> : vector<128x64xf32>
    %3 = tpu.matmul %1, %2, %cst {dimension_numbers = #tpu.dot_dimension_numbers<[1], [0], [0], [1], [0, 0, 1, 1], [], []>} : vector<128x27xf32>, vector<27x64xf32>, vector<128x64xf32> -> vector<128x64xf32>
    %c0_4 = arith.constant 0 : index
    %c0_5 = arith.constant 0 : index
    %4 = vector.load %arg4[%c0_4, %c0_5] : memref<1x64xf32, #tpu.memory_space<vmem>>, vector<1x64xf32>
    %5 = vector.broadcast %4 : vector<1x64xf32> to vector<128x64xf32>
    %6 = arith.addf %3, %5 : vector<128x64xf32>
    %cst_6 = arith.constant 0.000000e+00 : f32
    %7 = vector.broadcast %cst_6 : f32 to vector<128x64xf32>
    %8 = arith.maximumf %6, %7 : vector<128x64xf32>
    %c0_7 = arith.constant 0 : index
    %c0_8 = arith.constant 0 : index
    %c0_9 = arith.constant 0 : index
    %9 = vector.load %arg5[%c0_7, %c0_8, %c0_9] : memref<1x128x64xf32, #tpu.memory_space<vmem>>, vector<1x128x64xf32>
    %10 = vector.shape_cast %9 : vector<1x128x64xf32> to vector<128x64xf32>
    %11 = vector.shape_cast %8 : vector<128x64xf32> to vector<1x128x64xf32>
    tpu.vector_store %arg5[%c0_7, %c0_8, %c0_9], %11 {strides = array<i32>} : memref<1x128x64xf32, #tpu.memory_space<vmem>>, vector<1x128x64xf32>,
    return
  }
  func.func @transform_0(%arg0: i32, %arg1: i32) -> (i32, i32, i32) {
    %c0_i32 = arith.constant 0 : i32
    %c0_i32_0 = arith.constant 0 : i32
    return %arg0, %arg1, %c0_i32 : i32, i32, i32
  }
  func.func @transform_1(%arg0: i32, %arg1: i32) -> (i32, i32) {
    %c0_i32 = arith.constant 0 : i32
    %c0_i32_0 = arith.constant 0 : i32
    %c0_i32_1 = arith.constant 0 : i32
    return %c0_i32, %c0_i32_0 : i32, i32
  }
  func.func @transform_2(%arg0: i32, %arg1: i32) -> (i32, i32) {
    %c0_i32 = arith.constant 0 : i32
    %c0_i32_0 = arith.constant 0 : i32
    %c0_i32_1 = arith.constant 0 : i32
    return %c0_i32, %c0_i32_0 : i32, i32
  }
  func.func @transform_3(%arg0: i32, %arg1: i32) -> (i32, i32, i32) {
    %c0_i32 = arith.constant 0 : i32
    %c0_i32_0 = arith.constant 0 : i32
    return %arg0, %arg1, %c0_i32 : i32, i32, i32
  }
}

module attributes {stable_mosaic.version = 11 : i64} {
  func.func @_conv3x3_flat_kernel(%arg0: i32, %arg1: i32, %arg2: memref<1x342x64xf32, #tpu.memory_space<vmem>>, %arg3: memref<9x64x64xf32, #tpu.memory_space<vmem>>, %arg4: memref<1x64xf32, #tpu.memory_space<vmem>>, %arg5: memref<1x144x64xf32, #tpu.memory_space<vmem>>, %arg6: memref<144x64xf32, #tpu.memory_space<vmem>>) attributes {dimension_semantics = [#tpu.dimension_semantics<parallel>, #tpu.dimension_semantics<parallel>], iteration_bounds = array<i64: 2, 2>, scalar_prefetch = 0 : i64, scratch_operands = 1 : i64, tpu.core_type = #tpu.core_type<tc>, window_params = [{transform_indices = @transform_0, window_bounds = array<i64: 1, 342, 64>}, {pipeline_mode = #tpu.pipeline_mode<synchronous>, transform_indices = @transform_1, window_bounds = array<i64: 9, 64, 64>}, {pipeline_mode = #tpu.pipeline_mode<synchronous>, transform_indices = @transform_2, window_bounds = array<i64: 1, 64>}, {transform_indices = @transform_3, window_bounds = array<i64: 1, 144, 64>}]} {
    %c144_i32 = arith.constant 144 : i32
    %0 = arith.muli %arg1, %c144_i32 : i32
    %1 = tpu.assume_multiple %0, 8 : i32
    %c0_i32 = arith.constant 0 : i32
    %2 = arith.addi %1, %c0_i32 : i32
    %c0 = arith.constant 0 : index
    %3 = arith.index_cast %2 : i32 to index
    %c0_0 = arith.constant 0 : index
    %4 = vector.load %arg2[%c0, %3, %c0_0] : memref<1x342x64xf32, #tpu.memory_space<vmem>>, vector<1x144x64xf32>
    %5 = vector.shape_cast %4 : vector<1x144x64xf32> to vector<144x64xf32>
    %c0_1 = arith.constant 0 : index
    %c0_2 = arith.constant 0 : index
    %c0_3 = arith.constant 0 : index
    %6 = vector.load %arg3[%c0_1, %c0_2, %c0_3] : memref<9x64x64xf32, #tpu.memory_space<vmem>>, vector<1x64x64xf32>
    %7 = vector.shape_cast %6 : vector<1x64x64xf32> to vector<64x64xf32>
    %cst = arith.constant dense<0.000000e+00> : vector<144x64xf32>
    %8 = tpu.matmul %5, %7, %cst {dimension_numbers = #tpu.dot_dimension_numbers<[1], [0], [0], [1], [0, 0, 1, 1], [], []>} : vector<144x64xf32>, vector<64x64xf32>, vector<144x64xf32> -> vector<144x64xf32>
    %c0_4 = arith.constant 0 : index
    %c0_5 = arith.constant 0 : index
    %9 = vector.load %arg6[%c0_4, %c0_5] : memref<144x64xf32, #tpu.memory_space<vmem>>, vector<144x64xf32>
    tpu.vector_store %arg6[%c0_4, %c0_5], %8 {strides = array<i32>} : memref<144x64xf32, #tpu.memory_space<vmem>>, vector<144x64xf32>,
    %c1_i32 = arith.constant 1 : i32
    %10 = arith.addi %1, %c1_i32 : i32
    %c0_6 = arith.constant 0 : index
    %11 = arith.index_cast %10 : i32 to index
    %c0_7 = arith.constant 0 : index
    %12 = vector.load %arg2[%c0_6, %11, %c0_7] : memref<1x342x64xf32, #tpu.memory_space<vmem>>, vector<1x144x64xf32>
    %13 = vector.shape_cast %12 : vector<1x144x64xf32> to vector<144x64xf32>
    %c1 = arith.constant 1 : index
    %c0_8 = arith.constant 0 : index
    %c0_9 = arith.constant 0 : index
    %14 = vector.load %arg3[%c1, %c0_8, %c0_9] : memref<9x64x64xf32, #tpu.memory_space<vmem>>, vector<1x64x64xf32>
    %15 = vector.shape_cast %14 : vector<1x64x64xf32> to vector<64x64xf32>
    %cst_10 = arith.constant dense<0.000000e+00> : vector<144x64xf32>
    %16 = tpu.matmul %13, %15, %cst_10 {dimension_numbers = #tpu.dot_dimension_numbers<[1], [0], [0], [1], [0, 0, 1, 1], [], []>} : vector<144x64xf32>, vector<64x64xf32>, vector<144x64xf32> -> vector<144x64xf32>
    %c0_11 = arith.constant 0 : index
    %c0_12 = arith.constant 0 : index
    %17 = vector.load %arg6[%c0_11, %c0_12] : memref<144x64xf32, #tpu.memory_space<vmem>>, vector<144x64xf32>
    %18 = arith.addf %17, %16 : vector<144x64xf32>
    %c0_13 = arith.constant 0 : index
    %c0_14 = arith.constant 0 : index
    %19 = vector.load %arg6[%c0_13, %c0_14] : memref<144x64xf32, #tpu.memory_space<vmem>>, vector<144x64xf32>
    tpu.vector_store %arg6[%c0_13, %c0_14], %18 {strides = array<i32>} : memref<144x64xf32, #tpu.memory_space<vmem>>, vector<144x64xf32>,
    %c2_i32 = arith.constant 2 : i32
    %20 = arith.addi %1, %c2_i32 : i32
    %c0_15 = arith.constant 0 : index
    %21 = arith.index_cast %20 : i32 to index
    %c0_16 = arith.constant 0 : index
    %22 = vector.load %arg2[%c0_15, %21, %c0_16] : memref<1x342x64xf32, #tpu.memory_space<vmem>>, vector<1x144x64xf32>
    %23 = vector.shape_cast %22 : vector<1x144x64xf32> to vector<144x64xf32>
    %c2 = arith.constant 2 : index
    %c0_17 = arith.constant 0 : index
    %c0_18 = arith.constant 0 : index
    %24 = vector.load %arg3[%c2, %c0_17, %c0_18] : memref<9x64x64xf32, #tpu.memory_space<vmem>>, vector<1x64x64xf32>
    %25 = vector.shape_cast %24 : vector<1x64x64xf32> to vector<64x64xf32>
    %cst_19 = arith.constant dense<0.000000e+00> : vector<144x64xf32>
    %26 = tpu.matmul %23, %25, %cst_19 {dimension_numbers = #tpu.dot_dimension_numbers<[1], [0], [0], [1], [0, 0, 1, 1], [], []>} : vector<144x64xf32>, vector<64x64xf32>, vector<144x64xf32> -> vector<144x64xf32>
    %c0_20 = arith.constant 0 : index
    %c0_21 = arith.constant 0 : index
    %27 = vector.load %arg6[%c0_20, %c0_21] : memref<144x64xf32, #tpu.memory_space<vmem>>, vector<144x64xf32>
    %28 = arith.addf %27, %26 : vector<144x64xf32>
    %c0_22 = arith.constant 0 : index
    %c0_23 = arith.constant 0 : index
    %29 = vector.load %arg6[%c0_22, %c0_23] : memref<144x64xf32, #tpu.memory_space<vmem>>, vector<144x64xf32>
    tpu.vector_store %arg6[%c0_22, %c0_23], %28 {strides = array<i32>} : memref<144x64xf32, #tpu.memory_space<vmem>>, vector<144x64xf32>,
    %c18_i32 = arith.constant 18 : i32
    %30 = arith.addi %1, %c18_i32 : i32
    %c0_24 = arith.constant 0 : index
    %31 = arith.index_cast %30 : i32 to index
    %c0_25 = arith.constant 0 : index
    %32 = vector.load %arg2[%c0_24, %31, %c0_25] : memref<1x342x64xf32, #tpu.memory_space<vmem>>, vector<1x144x64xf32>
    %33 = vector.shape_cast %32 : vector<1x144x64xf32> to vector<144x64xf32>
    %c3 = arith.constant 3 : index
    %c0_26 = arith.constant 0 : index
    %c0_27 = arith.constant 0 : index
    %34 = vector.load %arg3[%c3, %c0_26, %c0_27] : memref<9x64x64xf32, #tpu.memory_space<vmem>>, vector<1x64x64xf32>
    %35 = vector.shape_cast %34 : vector<1x64x64xf32> to vector<64x64xf32>
    %cst_28 = arith.constant dense<0.000000e+00> : vector<144x64xf32>
    %36 = tpu.matmul %33, %35, %cst_28 {dimension_numbers = #tpu.dot_dimension_numbers<[1], [0], [0], [1], [0, 0, 1, 1], [], []>} : vector<144x64xf32>, vector<64x64xf32>, vector<144x64xf32> -> vector<144x64xf32>
    %c0_29 = arith.constant 0 : index
    %c0_30 = arith.constant 0 : index
    %37 = vector.load %arg6[%c0_29, %c0_30] : memref<144x64xf32, #tpu.memory_space<vmem>>, vector<144x64xf32>
    %38 = arith.addf %37, %36 : vector<144x64xf32>
    %c0_31 = arith.constant 0 : index
    %c0_32 = arith.constant 0 : index
    %39 = vector.load %arg6[%c0_31, %c0_32] : memref<144x64xf32, #tpu.memory_space<vmem>>, vector<144x64xf32>
    tpu.vector_store %arg6[%c0_31, %c0_32], %38 {strides = array<i32>} : memref<144x64xf32, #tpu.memory_space<vmem>>, vector<144x64xf32>,
    %c19_i32 = arith.constant 19 : i32
    %40 = arith.addi %1, %c19_i32 : i32
    %c0_33 = arith.constant 0 : index
    %41 = arith.index_cast %40 : i32 to index
    %c0_34 = arith.constant 0 : index
    %42 = vector.load %arg2[%c0_33, %41, %c0_34] : memref<1x342x64xf32, #tpu.memory_space<vmem>>, vector<1x144x64xf32>
    %43 = vector.shape_cast %42 : vector<1x144x64xf32> to vector<144x64xf32>
    %c4 = arith.constant 4 : index
    %c0_35 = arith.constant 0 : index
    %c0_36 = arith.constant 0 : index
    %44 = vector.load %arg3[%c4, %c0_35, %c0_36] : memref<9x64x64xf32, #tpu.memory_space<vmem>>, vector<1x64x64xf32>
    %45 = vector.shape_cast %44 : vector<1x64x64xf32> to vector<64x64xf32>
    %cst_37 = arith.constant dense<0.000000e+00> : vector<144x64xf32>
    %46 = tpu.matmul %43, %45, %cst_37 {dimension_numbers = #tpu.dot_dimension_numbers<[1], [0], [0], [1], [0, 0, 1, 1], [], []>} : vector<144x64xf32>, vector<64x64xf32>, vector<144x64xf32> -> vector<144x64xf32>
    %c0_38 = arith.constant 0 : index
    %c0_39 = arith.constant 0 : index
    %47 = vector.load %arg6[%c0_38, %c0_39] : memref<144x64xf32, #tpu.memory_space<vmem>>, vector<144x64xf32>
    %48 = arith.addf %47, %46 : vector<144x64xf32>
    %c0_40 = arith.constant 0 : index
    %c0_41 = arith.constant 0 : index
    %49 = vector.load %arg6[%c0_40, %c0_41] : memref<144x64xf32, #tpu.memory_space<vmem>>, vector<144x64xf32>
    tpu.vector_store %arg6[%c0_40, %c0_41], %48 {strides = array<i32>} : memref<144x64xf32, #tpu.memory_space<vmem>>, vector<144x64xf32>,
    %c20_i32 = arith.constant 20 : i32
    %50 = arith.addi %1, %c20_i32 : i32
    %c0_42 = arith.constant 0 : index
    %51 = arith.index_cast %50 : i32 to index
    %c0_43 = arith.constant 0 : index
    %52 = vector.load %arg2[%c0_42, %51, %c0_43] : memref<1x342x64xf32, #tpu.memory_space<vmem>>, vector<1x144x64xf32>
    %53 = vector.shape_cast %52 : vector<1x144x64xf32> to vector<144x64xf32>
    %c5 = arith.constant 5 : index
    %c0_44 = arith.constant 0 : index
    %c0_45 = arith.constant 0 : index
    %54 = vector.load %arg3[%c5, %c0_44, %c0_45] : memref<9x64x64xf32, #tpu.memory_space<vmem>>, vector<1x64x64xf32>
    %55 = vector.shape_cast %54 : vector<1x64x64xf32> to vector<64x64xf32>
    %cst_46 = arith.constant dense<0.000000e+00> : vector<144x64xf32>
    %56 = tpu.matmul %53, %55, %cst_46 {dimension_numbers = #tpu.dot_dimension_numbers<[1], [0], [0], [1], [0, 0, 1, 1], [], []>} : vector<144x64xf32>, vector<64x64xf32>, vector<144x64xf32> -> vector<144x64xf32>
    %c0_47 = arith.constant 0 : index
    %c0_48 = arith.constant 0 : index
    %57 = vector.load %arg6[%c0_47, %c0_48] : memref<144x64xf32, #tpu.memory_space<vmem>>, vector<144x64xf32>
    %58 = arith.addf %57, %56 : vector<144x64xf32>
    %c0_49 = arith.constant 0 : index
    %c0_50 = arith.constant 0 : index
    %59 = vector.load %arg6[%c0_49, %c0_50] : memref<144x64xf32, #tpu.memory_space<vmem>>, vector<144x64xf32>
    tpu.vector_store %arg6[%c0_49, %c0_50], %58 {strides = array<i32>} : memref<144x64xf32, #tpu.memory_space<vmem>>, vector<144x64xf32>,
    %c36_i32 = arith.constant 36 : i32
    %60 = arith.addi %1, %c36_i32 : i32
    %c0_51 = arith.constant 0 : index
    %61 = arith.index_cast %60 : i32 to index
    %c0_52 = arith.constant 0 : index
    %62 = vector.load %arg2[%c0_51, %61, %c0_52] : memref<1x342x64xf32, #tpu.memory_space<vmem>>, vector<1x144x64xf32>
    %63 = vector.shape_cast %62 : vector<1x144x64xf32> to vector<144x64xf32>
    %c6 = arith.constant 6 : index
    %c0_53 = arith.constant 0 : index
    %c0_54 = arith.constant 0 : index
    %64 = vector.load %arg3[%c6, %c0_53, %c0_54] : memref<9x64x64xf32, #tpu.memory_space<vmem>>, vector<1x64x64xf32>
    %65 = vector.shape_cast %64 : vector<1x64x64xf32> to vector<64x64xf32>
    %cst_55 = arith.constant dense<0.000000e+00> : vector<144x64xf32>
    %66 = tpu.matmul %63, %65, %cst_55 {dimension_numbers = #tpu.dot_dimension_numbers<[1], [0], [0], [1], [0, 0, 1, 1], [], []>} : vector<144x64xf32>, vector<64x64xf32>, vector<144x64xf32> -> vector<144x64xf32>
    %c0_56 = arith.constant 0 : index
    %c0_57 = arith.constant 0 : index
    %67 = vector.load %arg6[%c0_56, %c0_57] : memref<144x64xf32, #tpu.memory_space<vmem>>, vector<144x64xf32>
    %68 = arith.addf %67, %66 : vector<144x64xf32>
    %c0_58 = arith.constant 0 : index
    %c0_59 = arith.constant 0 : index
    %69 = vector.load %arg6[%c0_58, %c0_59] : memref<144x64xf32, #tpu.memory_space<vmem>>, vector<144x64xf32>
    tpu.vector_store %arg6[%c0_58, %c0_59], %68 {strides = array<i32>} : memref<144x64xf32, #tpu.memory_space<vmem>>, vector<144x64xf32>,
    %c37_i32 = arith.constant 37 : i32
    %70 = arith.addi %1, %c37_i32 : i32
    %c0_60 = arith.constant 0 : index
    %71 = arith.index_cast %70 : i32 to index
    %c0_61 = arith.constant 0 : index
    %72 = vector.load %arg2[%c0_60, %71, %c0_61] : memref<1x342x64xf32, #tpu.memory_space<vmem>>, vector<1x144x64xf32>
    %73 = vector.shape_cast %72 : vector<1x144x64xf32> to vector<144x64xf32>
    %c7 = arith.constant 7 : index
    %c0_62 = arith.constant 0 : index
    %c0_63 = arith.constant 0 : index
    %74 = vector.load %arg3[%c7, %c0_62, %c0_63] : memref<9x64x64xf32, #tpu.memory_space<vmem>>, vector<1x64x64xf32>
    %75 = vector.shape_cast %74 : vector<1x64x64xf32> to vector<64x64xf32>
    %cst_64 = arith.constant dense<0.000000e+00> : vector<144x64xf32>
    %76 = tpu.matmul %73, %75, %cst_64 {dimension_numbers = #tpu.dot_dimension_numbers<[1], [0], [0], [1], [0, 0, 1, 1], [], []>} : vector<144x64xf32>, vector<64x64xf32>, vector<144x64xf32> -> vector<144x64xf32>
    %c0_65 = arith.constant 0 : index
    %c0_66 = arith.constant 0 : index
    %77 = vector.load %arg6[%c0_65, %c0_66] : memref<144x64xf32, #tpu.memory_space<vmem>>, vector<144x64xf32>
    %78 = arith.addf %77, %76 : vector<144x64xf32>
    %c0_67 = arith.constant 0 : index
    %c0_68 = arith.constant 0 : index
    %79 = vector.load %arg6[%c0_67, %c0_68] : memref<144x64xf32, #tpu.memory_space<vmem>>, vector<144x64xf32>
    tpu.vector_store %arg6[%c0_67, %c0_68], %78 {strides = array<i32>} : memref<144x64xf32, #tpu.memory_space<vmem>>, vector<144x64xf32>,
    %c38_i32 = arith.constant 38 : i32
    %80 = arith.addi %1, %c38_i32 : i32
    %c0_69 = arith.constant 0 : index
    %81 = arith.index_cast %80 : i32 to index
    %c0_70 = arith.constant 0 : index
    %82 = vector.load %arg2[%c0_69, %81, %c0_70] : memref<1x342x64xf32, #tpu.memory_space<vmem>>, vector<1x144x64xf32>
    %83 = vector.shape_cast %82 : vector<1x144x64xf32> to vector<144x64xf32>
    %c8 = arith.constant 8 : index
    %c0_71 = arith.constant 0 : index
    %c0_72 = arith.constant 0 : index
    %84 = vector.load %arg3[%c8, %c0_71, %c0_72] : memref<9x64x64xf32, #tpu.memory_space<vmem>>, vector<1x64x64xf32>
    %85 = vector.shape_cast %84 : vector<1x64x64xf32> to vector<64x64xf32>
    %cst_73 = arith.constant dense<0.000000e+00> : vector<144x64xf32>
    %86 = tpu.matmul %83, %85, %cst_73 {dimension_numbers = #tpu.dot_dimension_numbers<[1], [0], [0], [1], [0, 0, 1, 1], [], []>} : vector<144x64xf32>, vector<64x64xf32>, vector<144x64xf32> -> vector<144x64xf32>
    %c0_74 = arith.constant 0 : index
    %c0_75 = arith.constant 0 : index
    %87 = vector.load %arg6[%c0_74, %c0_75] : memref<144x64xf32, #tpu.memory_space<vmem>>, vector<144x64xf32>
    %88 = arith.addf %87, %86 : vector<144x64xf32>
    %c0_76 = arith.constant 0 : index
    %c0_77 = arith.constant 0 : index
    %89 = vector.load %arg6[%c0_76, %c0_77] : memref<144x64xf32, #tpu.memory_space<vmem>>, vector<144x64xf32>
    tpu.vector_store %arg6[%c0_76, %c0_77], %88 {strides = array<i32>} : memref<144x64xf32, #tpu.memory_space<vmem>>, vector<144x64xf32>,
    %c0_78 = arith.constant 0 : index
    %c0_79 = arith.constant 0 : index
    %90 = vector.load %arg6[%c0_78, %c0_79] : memref<144x64xf32, #tpu.memory_space<vmem>>, vector<144x64xf32>
    %c0_80 = arith.constant 0 : index
    %c0_81 = arith.constant 0 : index
    %91 = vector.load %arg4[%c0_80, %c0_81] : memref<1x64xf32, #tpu.memory_space<vmem>>, vector<1x64xf32>
    %92 = vector.broadcast %91 : vector<1x64xf32> to vector<144x64xf32>
    %93 = arith.addf %90, %92 : vector<144x64xf32>
    %c0_82 = arith.constant 0 : index
    %c0_83 = arith.constant 0 : index
    %c0_84 = arith.constant 0 : index
    %94 = vector.load %arg5[%c0_82, %c0_83, %c0_84] : memref<1x144x64xf32, #tpu.memory_space<vmem>>, vector<1x144x64xf32>
    %95 = vector.shape_cast %94 : vector<1x144x64xf32> to vector<144x64xf32>
    %96 = vector.shape_cast %93 : vector<144x64xf32> to vector<1x144x64xf32>
    tpu.vector_store %arg5[%c0_82, %c0_83, %c0_84], %96 {strides = array<i32>} : memref<1x144x64xf32, #tpu.memory_space<vmem>>, vector<1x144x64xf32>,
    return
  }
  func.func @transform_0(%arg0: i32, %arg1: i32) -> (i32, i32, i32) {
    %c0_i32 = arith.constant 0 : i32
    %c0_i32_0 = arith.constant 0 : i32
    %c0_i32_1 = arith.constant 0 : i32
    return %arg0, %c0_i32, %c0_i32_0 : i32, i32, i32
  }
  func.func @transform_1(%arg0: i32, %arg1: i32) -> (i32, i32, i32) {
    %c0_i32 = arith.constant 0 : i32
    %c0_i32_0 = arith.constant 0 : i32
    %c0_i32_1 = arith.constant 0 : i32
    %c0_i32_2 = arith.constant 0 : i32
    return %c0_i32, %c0_i32_0, %c0_i32_1 : i32, i32, i32
  }
  func.func @transform_2(%arg0: i32, %arg1: i32) -> (i32, i32) {
    %c0_i32 = arith.constant 0 : i32
    %c0_i32_0 = arith.constant 0 : i32
    %c0_i32_1 = arith.constant 0 : i32
    return %c0_i32, %c0_i32_0 : i32, i32
  }
  func.func @transform_3(%arg0: i32, %arg1: i32) -> (i32, i32, i32) {
    %c0_i32 = arith.constant 0 : i32
    %c0_i32_0 = arith.constant 0 : i32
    return %arg0, %arg1, %c0_i32 : i32, i32, i32
  }
}

</mosaic_0001>

<bundles_post_ra>
// kernel: feature_extractor_forward.2
= control target key start
LH: loop header
LB: loop body
LE: loop exit
PB: predicated region body
PF: predicated region fallthrough
CT: control target
= control target key end

     0   :  { %s757_s12 = smov 0   ;;  %s759_s13 = smov 0   ;;  %s883_s0 = inlined_call_operand.vmem [shape: f32[2,256,27], index: 0, kind: input, shape index: {}]   ;;  %s884_s1 = inlined_call_operand.vmem [shape: f32[27,64], index: 1, kind: input, shape index: {}]   ;;  %s885_s2 = inlined_call_operand.vmem [shape: f32[1,64], index: 2, kind: input, shape index: {}]   ;;  %s886_s3 = inlined_call_operand.vmem [shape: f32[2,256,64], index: 3, kind: output, shape index: {}]  }
   0x1   :  { %s761_s14 = smov 0   ;;  %s763_s15 = smov 0  }
   0x2   :  { %s765_s16 = smov 0  }
   0x3 LB: > { %s22_s17 = sadd.s32 1, %s726_s14  ;;  %s25_s18 = sadd.s32 1, %s730_s15  ;;  %s734_s16 = sphi %s765_s16, %s13_s16   ;;  %s730_s15 = sphi %s763_s15, %s890_s15   ;;  %s726_s14 = sphi %s761_s14, %s889_s14   ;;  %s722_s13 = sphi %s759_s13, %s888_s13   ;;  %s718_s12 = sphi %s757_s12, %s887_s12  }
   0x4   : > { %p23_p0 = scmp.ge.s32.totalorder %s22_s17, 2  ;;  %p562_p1 = scmp.ge.s32.totalorder %s734_s16, 1 }
   0x5   : > { %p158_p2 = scmp.lt.s32.totalorder %s734_s16, 5 }
   0x6   : > { %s892_s17 = smov (%p23_p0, %s22_s17), 0  ;;  %s894_s18 = smov (!%p23_p0, %s25_s18), %s730_s15 }
   0x7   : > { %p159_p3 = pnand %p562_p1, %p158_p2  ;;  %p27_p4 = scmp.ge.s32.totalorder %s894_s18, 2 }
   0x8   : > { %v226_v0 = vld [vmem:[%s884_s1] sm:$0xff] (!%p159_p3)  ;;  %v227_v1 = vld [vmem:[%s884_s1 + $0x8] sm:$0xff] (!%p159_p3)  ;;  %v228_v2 = vld [vmem:[%s884_s1 + $0x10] sm:$0xff] (!%p159_p3)  ;;  %vm286_vm0 = vcmask (!%p159_p3), 1042432   ;;  %s563_s25 = sshll.u32 (!%p159_p3), %s718_s12, 4  ;;  %p191_p5 = scmp.lt.s32.totalorder (!%p159_p3), %s722_s13, 1 }
   0x9   : > { %s896_s18 = smov (%p27_p4, %s894_s18), 0  ;;  %162 = sbr.rel (%p159_p3) target bundleno = 254 (0xfe), region = 32 }
   0xa   : > { %v641_v3 = vpack.c.bf16 (!%p159_p3), %v227_v1, %v226_v0  ;;  %v229_v4 = vld [vmem:[%s884_s1 + $0x18] sm:$0x7] (!%p159_p3)  ;;  %p193_p6 = scmp.lt.s32.totalorder (!%p159_p3), %s563_s25, 31  ;;  %vm736_vm1 = vmmov (!%p159_p3), 1   ;;  %vm237_vm3 = vcmask (!%p159_p3), 220160   ;;  %vm451_vm4 = vcmask (!%p159_p3), 523264  }
   0xb   : > { %v645_v5 = vpack.c.bf16 (!%p159_p3), %v229_v4, %v228_v2  ;;  %vm646_vm2 = vmpackc.low (!%p159_p3), %vm286_vm0, %vm736_vm1  ;;  %v569_v22 = vld [vmem:[%s885_s2] ss:$0 sm:$0xff] (!%p159_p3) }
   0xc   : > { %642 = vmatprep.subr.bf16.mxu0 (!%p159_p3), %v641_v3  ;;  %651 = vmatprep.subr.bf16.mxu1 (!%p159_p3), %v641_v3 }
   0xd   : > { %644 = vmatpush3.bf16.msra.mxu0 (!%p159_p3), %v641_v3  ;;  %653 = vmatpush3.bf16.msra.mxu1 (!%p159_p3), %v641_v3 }
   0xe   : > { %647 = vmatprep.subr.msk.bf16.mxu0 (!%p159_p3), %vm646_vm2, %v645_v5  ;;  %652 = vmatprep.subr.msk.bf16.mxu1 (!%p159_p3), %vm646_vm2, %v645_v5 }
  0x10   : > { %s898_s13 = smov (!%p191_p5, %s722_s13), 1  ;;  %s900_s25 = smov (!%p193_p6, %s563_s25), 31 }
  0x11   : > { %s564_s28 = sshll.u32 %s898_s13, 5  ;;  %650 = vmatpush3.bf16.msk.msra.mxu0 %vm646_vm2, %v645_v5  ;;  %654 = vmatpush3.bf16.msk.msra.mxu1 %vm646_vm2, %v645_v5 }
  0x12   : > { %s802_s29 = sadd.s32 %s564_s28, %s900_s25 }
  0x13   : > { %s565_s30 = sshll.u32 %s802_s29, 3 }
  0x14   : > { %s198_s6 = scalar_lea.vmem %s883_s0, %s565_s30  ;;  %s834_s11 = scalar_lea.vmem %s886_s3, %s565_s30 }
  0x15   : > { %v210_v6 = vld [vmem:[%s198_s6] sm:$0xff]  ;;  %v211_v8 = vld [vmem:[%s198_s6 + $0x8] sm:$0xff]  ;;  %v212_v10 = vld [vmem:[%s198_s6 + $0x10] sm:$0xff] }
  0x16   : > { %v218_v7 = vld [vmem:[%s198_s6 + $0x40] sm:$0xff]  ;;  %617 = vmatprep.mubr.msk.f32.mxu0 %vm237_vm3, %v210_v6  ;;  %v219_v9 = vld [vmem:[%s198_s6 + $0x48] sm:$0xff]  ;;  %v220_v11 = vld [vmem:[%s198_s6 + $0x50] sm:$0xff] }
  0x17   : > { %629 = vmatprep.mubr.msk.f32.mxu1 %vm237_vm3, %v218_v7  ;;  %618 = vmatmul.mubr.msk.f32.vlgmr.msra.gmra.mrb[0].mxu0 %vm237_vm3, %v211_v8  ;;  %v213_v12 = vld [vmem:[%s198_s6 + $0x18] sm:$0xff]  ;;  %v214_v14 = vld [vmem:[%s198_s6 + $0x20] sm:$0xff]  ;;  %v215_v16 = vld [vmem:[%s198_s6 + $0x28] sm:$0xff] }
  0x18   : > { %630 = vmatmul.mubr.msk.f32.vlgmr.msra.gmra.mrb[0].mxu1 %vm237_vm3, %v219_v9  ;;  %620 = vmatprep.mubr.msk.f32.mxu0 %vm237_vm3, %v212_v10  ;;  %v221_v13 = vld [vmem:[%s198_s6 + $0x58] sm:$0xff]  ;;  %v222_v15 = vld [vmem:[%s198_s6 + $0x60] sm:$0xff]  ;;  %v223_v17 = vld [vmem:[%s198_s6 + $0x68] sm:$0xff] }
  0x19   : > { %632 = vmatprep.mubr.msk.f32.mxu1 %vm237_vm3, %v220_v11  ;;  %v216_v18 = vld [vmem:[%s198_s6 + $0x30] sm:$0xff]  ;;  %v217_v20 = vld [vmem:[%s198_s6 + $0x38] sm:$0xff] }
  0x1a   : > { %v224_v19 = vld [vmem:[%s198_s6 + $0x70] sm:$0xff]  ;;  %v225_v21 = vld [vmem:[%s198_s6 + $0x78] sm:$0xff] }
  0x1b   : > { %621 = vmatmul.mubr.msk.f32.gmra.mrb[2].mxu0 %vm237_vm3, %v213_v12 }
  0x1c   : > { %633 = vmatmul.mubr.msk.f32.gmra.mrb[2].mxu1 %vm237_vm3, %v221_v13  ;;  %623 = vmatprep.mubr.msk.f32.mxu0 %vm237_vm3, %v214_v14 }
  0x1d   : > { %635 = vmatprep.mubr.msk.f32.mxu1 %vm237_vm3, %v222_v15 }
  0x1f   : > { %624 = vmatmul.mubr.msk.f32.gmra.mrb[4].mxu0 %vm237_vm3, %v215_v16 }
  0x20   : > { %636 = vmatmul.mubr.msk.f32.gmra.mrb[4].mxu1 %vm237_vm3, %v223_v17  ;;  %626 = vmatprep.mubr.msk.f32.mxu0 %vm237_vm3, %v216_v18 }
  0x21   : > { %638 = vmatprep.mubr.msk.f32.mxu1 %vm237_vm3, %v224_v19 }
  0x23   : > { %627 = vmatmul.mubr.msk.f32.gmra.mrb[6].mxu0 %vm237_vm3, %v217_v20 }
  0x24   : > { %639 = vmatmul.mubr.msk.f32.gmra.mrb[6].mxu1 %vm237_vm3, %v225_v21 }
  0xea   : > { %v619_v23 = vpop.f32.mrb[0].mxu0 }
  0xeb   : > { %v631_v24 = vpop.f32.mrb[0].mxu1  ;;  %v362_v25 = vadd.f32 %v619_v23, %v569_v22  ;;  %v356_v27 = vpop.f32.mrb[1].mxu0 }
  0xec   : > { %v402_v26 = vadd.f32 %v631_v24, %v569_v22  ;;  %v396_v28 = vpop.f32.mrb[1].mxu1  ;;  %v357_v29 = vadd.f32 %v569_v22, %v356_v27 }
  0xed   : > { %v397_v30 = vadd.f32 %v569_v22, %v396_v28  ;;  %v436_v31 = vmax.f32 %v362_v25, 0.0 }
  0xee   : > { %v444_v32 = vmax.f32 %v402_v26, 0.0  ;;  %v435_v33 = vmax.f32 %v357_v29, 0.0  ;;  %v622_v35 = vpop.f32.mrb[2].mxu0 }
  0xef   : > { %v443_v34 = vmax.f32 %v397_v30, 0.0  ;;  %v634_v36 = vpop.f32.mrb[2].mxu1  ;;  %453 = vst.msk [vmem:[%s834_s11 + $0x8] sm:$0xff] %vm451_vm4, %v436_v31  ;;  %v372_v37 = vadd.f32 %v622_v35, %v569_v22  ;;  %v366_v39 = vpop.f32.mrb[3].mxu0 }
  0xf0   : > { %461 = vst.msk [vmem:[%s834_s11 + $0x48] sm:$0xff] %vm451_vm4, %v444_v32  ;;  %v412_v38 = vadd.f32 %v634_v36, %v569_v22  ;;  %v406_v40 = vpop.f32.mrb[3].mxu1  ;;  %452 = vst.msk [vmem:[%s834_s11] sm:$0xff] %vm451_vm4, %v435_v33  ;;  %v367_v41 = vadd.f32 %v569_v22, %v366_v39 }
  0xf1   : > { %460 = vst.msk [vmem:[%s834_s11 + $0x40] sm:$0xff] %vm451_vm4, %v443_v34  ;;  %v407_v42 = vadd.f32 %v569_v22, %v406_v40  ;;  %v438_v43 = vmax.f32 %v372_v37, 0.0 }
  0xf2   : > { %v446_v44 = vmax.f32 %v412_v38, 0.0  ;;  %v437_v45 = vmax.f32 %v367_v41, 0.0  ;;  %v625_v47 = vpop.f32.mrb[4].mxu0 }
  0xf3   : > { %v445_v46 = vmax.f32 %v407_v42, 0.0  ;;  %v637_v48 = vpop.f32.mrb[4].mxu1  ;;  %455 = vst.msk [vmem:[%s834_s11 + $0x18] sm:$0xff] %vm451_vm4, %v438_v43  ;;  %v382_v49 = vadd.f32 %v625_v47, %v569_v22  ;;  %v376_v51 = vpop.f32.mrb[5].mxu0 }
  0xf4   : > { %463 = vst.msk [vmem:[%s834_s11 + $0x58] sm:$0xff] %vm451_vm4, %v446_v44  ;;  %v422_v50 = vadd.f32 %v637_v48, %v569_v22  ;;  %v416_v52 = vpop.f32.mrb[5].mxu1  ;;  %454 = vst.msk [vmem:[%s834_s11 + $0x10] sm:$0xff] %vm451_vm4, %v437_v45  ;;  %v377_v53 = vadd.f32 %v569_v22, %v376_v51 }
  0xf5   : > { %462 = vst.msk [vmem:[%s834_s11 + $0x50] sm:$0xff] %vm451_vm4, %v445_v46  ;;  %v417_v54 = vadd.f32 %v569_v22, %v416_v52  ;;  %v440_v55 = vmax.f32 %v382_v49, 0.0 }
  0xf6   : > { %v448_v56 = vmax.f32 %v422_v50, 0.0  ;;  %v439_v57 = vmax.f32 %v377_v53, 0.0  ;;  %v628_v59 = vpop.f32.mrb[6].mxu0 }
  0xf7   : > { %v447_v58 = vmax.f32 %v417_v54, 0.0  ;;  %v640_v60 = vpop.f32.mrb[6].mxu1  ;;  %457 = vst.msk [vmem:[%s834_s11 + $0x28] sm:$0xff] %vm451_vm4, %v440_v55  ;;  %v392_v61 = vadd.f32 %v628_v59, %v569_v22  ;;  %v386_v63 = vpop.f32.mrb[7].mxu0 }
  0xf8   : > { %465 = vst.msk [vmem:[%s834_s11 + $0x68] sm:$0xff] %vm451_vm4, %v448_v56  ;;  %v432_v62 = vadd.f32 %v640_v60, %v569_v22  ;;  %v426_v0 = vpop.f32.mrb[7].mxu1  ;;  %456 = vst.msk [vmem:[%s834_s11 + $0x20] sm:$0xff] %vm451_vm4, %v439_v57  ;;  %v387_v1 = vadd.f32 %v569_v22, %v386_v63 }
  0xf9   : > { %464 = vst.msk [vmem:[%s834_s11 + $0x60] sm:$0xff] %vm451_vm4, %v447_v58  ;;  %v427_v2 = vadd.f32 %v569_v22, %v426_v0  ;;  %v442_v3 = vmax.f32 %v392_v61, 0.0 }
  0xfa   : > { %v450_v4 = vmax.f32 %v432_v62, 0.0  ;;  %v441_v5 = vmax.f32 %v387_v1, 0.0 }
  0xfb   : > { %v449_v6 = vmax.f32 %v427_v2, 0.0  ;;  %459 = vst.msk [vmem:[%s834_s11 + $0x38] sm:$0xff] %vm451_vm4, %v442_v3 }
  0xfc   : > { %467 = vst.msk [vmem:[%s834_s11 + $0x78] sm:$0xff] %vm451_vm4, %v450_v4  ;;  %458 = vst.msk [vmem:[%s834_s11 + $0x30] sm:$0xff] %vm451_vm4, %v441_v5 }
  0xfd   : > { %466 = vst.msk [vmem:[%s834_s11 + $0x70] sm:$0xff] %vm451_vm4, %v449_v6 }
  0xfe PF: > { %s13_s16 = sadd.s32 1, %s734_s16   ;;  %s887_s12 = smov %s726_s14 }
  0xff   : > { %p10_p7 = scmp.ge.s32.totalorder %s13_s16, 6   ;;  %s888_s13 = smov %s730_s15 }
 0x100   : > { %s889_s14 = smov %s892_s17  ;;  %s890_s15 = smov %s896_s18 }
 0x101   :  { %12 = sbr.rel (!%p10_p7) target bundleno = 3 (0x3), region = 62 }

// kernel: feature_extractor_forward.3
= control target key start
LH: loop header
LB: loop body
LE: loop exit
PB: predicated region body
PF: predicated region fallthrough
CT: control target
= control target key end

     0   :  { %s4212_s12 = smov 0   ;;  %s4214_s13 = smov 0   ;;  %s5104_s0 = inlined_call_operand.vmem [shape: f32[2,342,64], index: 0, kind: input, shape index: {}]   ;;  %s5105_s1 = inlined_call_operand.vmem [shape: f32[9,64,64], index: 1, kind: input, shape index: {}]   ;;  %s5106_s2 = inlined_call_operand.vmem [shape: f32[1,64], index: 2, kind: input, shape index: {}]   ;;  %s5107_s3 = inlined_call_operand.vmem [shape: f32[2,288,64], index: 3, kind: output, shape index: {}]  }
   0x1   :  { %s4216_s14 = smov 0   ;;  %s4218_s15 = smov 0  }
   0x2   :  { %s4220_s16 = smov 0  }
   0x3 LB: > { %s22_s17 = sadd.s32 1, %s4182_s14  ;;  %s25_s18 = sadd.s32 1, %s4186_s15  ;;  %s4190_s16 = sphi %s4220_s16, %s13_s16   ;;  %s4186_s15 = sphi %s4218_s15, %s5112_s15   ;;  %s4182_s14 = sphi %s4216_s14, %s5111_s14   ;;  %s4178_s13 = sphi %s4214_s13, %s5110_s13   ;;  %s4174_s12 = sphi %s4212_s12, %s5109_s12  }
   0x4   : > { %p23_p0 = scmp.ge.s32.totalorder %s22_s17, 2  ;;  %p2961_p1 = scmp.ge.s32.totalorder %s4190_s16, 1 }
   0x5   : > { %p151_p2 = scmp.lt.s32.totalorder %s4190_s16, 5 }
   0x6   : > { %s5114_s17 = smov (%p23_p0, %s22_s17), 0  ;;  %s5116_s18 = smov (!%p23_p0, %s25_s18), %s4186_s15 }
   0x7   : > { %p152_p3 = pnand %p2961_p1, %p151_p2  ;;  %p27_p4 = scmp.ge.s32.totalorder %s5116_s18, 2 }
   0x8   : > { %v214_v0 = vld [vmem:[%s5105_s1] sm:$0xff] (!%p152_p3)  ;;  %v215_v1 = vld [vmem:[%s5105_s1 + $0x8] sm:$0xff] (!%p152_p3)  ;;  %v216_v2 = vld [vmem:[%s5105_s1 + $0x10] sm:$0xff] (!%p152_p3)  ;;  %p179_p5 = scmp.lt.s32.totalorder (!%p152_p3), %s4178_s13, 1  ;;  %s194_s4 = smul.u32 (!%p152_p3), 144, %s4174_s12  ;;  %vm222_vm0 = vcmask (!%p152_p3), 523264  }
   0x9   : > { %s5118_s18 = smov (%p27_p4, %s5116_s18), 0  ;;  %155 = sbr.rel (%p152_p3) target bundleno = 424 (0x1a8), region = 32 }
   0xa   : > { %v3958_v3 = vpack.c.bf16 (!%p152_p3), %v215_v1, %v214_v0  ;;  %v217_v4 = vld [vmem:[%s5105_s1 + $0x18] sm:$0xff] (!%p152_p3)  ;;  %v218_v6 = vld [vmem:[%s5105_s1 + $0x20] sm:$0xff] (!%p152_p3)  ;;  %v219_v7 = vld [vmem:[%s5105_s1 + $0x28] sm:$0xff] (!%p152_p3) }
   0xb   : > { %v3962_v5 = vpack.c.bf16 (!%p152_p3), %v217_v4, %v216_v2  ;;  %v3966_v8 = vpack.c.bf16 (!%p152_p3), %v219_v7, %v218_v6  ;;  %v220_v9 = vld [vmem:[%s5105_s1 + $0x30] sm:$0xff] (!%p152_p3)  ;;  %v221_v10 = vld [vmem:[%s5105_s1 + $0x38] sm:$0xff] (!%p152_p3)  ;;  %v3000_v13 = vld [vmem:[%s5105_s1 + $0x40] sm:$0xff] (!%p152_p3) }
   0xc   : > { %4102 = vmatprep.subr.bf16.mxu1 (!%p152_p3), %v3958_v3  ;;  %3959 = vmatprep.subr.bf16.mxu0 (!%p152_p3), %v3958_v3  ;;  %v3970_v12 = vpack.c.bf16 (!%p152_p3), %v221_v10, %v220_v9  ;;  %v3001_v14 = vld [vmem:[%s5105_s1 + $0x48] sm:$0xff] (!%p152_p3)  ;;  %v3044_v16 = vld [vmem:[%s5105_s1 + $0x80] sm:$0xff] (!%p152_p3)  ;;  %v3002_v20 = vld [vmem:[%s5105_s1 + $0x50] sm:$0xff] (!%p152_p3) }
   0xd   : > { %4106 = vmatpush3.bf16.msra.mxu1 (!%p152_p3), %v3958_v3  ;;  %3961 = vmatpush3.bf16.msra.mxu0 (!%p152_p3), %v3958_v3  ;;  %v3045_v17 = vld [vmem:[%s5105_s1 + $0x88] sm:$0xff] (!%p152_p3)  ;;  %v3974_v18 = vpack.c.bf16 (!%p152_p3), %v3001_v14, %v3000_v13  ;;  %v3003_v21 = vld [vmem:[%s5105_s1 + $0x58] sm:$0xff] (!%p152_p3)  ;;  %v3004_v26 = vld [vmem:[%s5105_s1 + $0x60] sm:$0xff] (!%p152_p3) }
   0xe   : > { %4103 = vmatprep.subr.bf16.mxu1 (!%p152_p3), %v3962_v5  ;;  %3963 = vmatprep.subr.bf16.mxu0 (!%p152_p3), %v3962_v5  ;;  %v3990_v19 = vpack.c.bf16 (!%p152_p3), %v3045_v17, %v3044_v16  ;;  %v3978_v25 = vpack.c.bf16 (!%p152_p3), %v3003_v21, %v3002_v20  ;;  %v3005_v27 = vld [vmem:[%s5105_s1 + $0x68] sm:$0xff] (!%p152_p3)  ;;  %v3046_v29 = vld [vmem:[%s5105_s1 + $0x90] sm:$0xff] (!%p152_p3)  ;;  %v3047_v30 = vld [vmem:[%s5105_s1 + $0x98] sm:$0xff] (!%p152_p3) }
   0xf   : > { %v3982_v34 = vpack.c.bf16 (!%p152_p3), %v3005_v27, %v3004_v26  ;;  %v3006_v35 = vld [vmem:[%s5105_s1 + $0x70] sm:$0xff] (!%p152_p3)  ;;  %v3994_v36 = vpack.c.bf16 (!%p152_p3), %v3047_v30, %v3046_v29  ;;  %v3007_v37 = vld [vmem:[%s5105_s1 + $0x78] sm:$0xff] (!%p152_p3)  ;;  %v3048_v38 = vld [vmem:[%s5105_s1 + $0xa0] sm:$0xff] (!%p152_p3) }
  0x10   : > { %s5120_s13 = smov (!%p179_p5, %s4178_s13), 1  ;;  %v3049_v39 = vld [vmem:[%s5105_s1 + $0xa8] sm:$0xff]  ;;  %v3986_v44 = vpack.c.bf16 %v3007_v37, %v3006_v35  ;;  %v3088_v45 = vld [vmem:[%s5105_s1 + $0xc0] sm:$0xff]  ;;  %v3050_v48 = vld [vmem:[%s5105_s1 + $0xb0] sm:$0xff] }
  0x11   : > { %s4110_s5 = smul.u32 344, %s5120_s13  ;;  %4107 = vmatpush3.bf16.msra.mxu1 %v3962_v5  ;;  %3965 = vmatpush3.bf16.msra.mxu0 %v3962_v5  ;;  %v3998_v46 = vpack.c.bf16 %v3049_v39, %v3048_v38  ;;  %v3089_v47 = vld [vmem:[%s5105_s1 + $0xc8] sm:$0xff]  ;;  %v3051_v49 = vld [vmem:[%s5105_s1 + $0xb8] sm:$0xff]  ;;  %v3132_v53 = vld [vmem:[%s5105_s1 + $0x100] sm:$0xff] }
  0x12   : > { %4104 = vmatprep.subr.bf16.mxu1 %v3966_v8  ;;  %3967 = vmatprep.subr.bf16.mxu0 %v3966_v8  ;;  %v3133_v54 = vld [vmem:[%s5105_s1 + $0x108] sm:$0xff]  ;;  %v4006_v56 = vpack.c.bf16 %v3089_v47, %v3088_v45  ;;  %v4002_v57 = vpack.c.bf16 %v3051_v49, %v3050_v48  ;;  %v3134_v61 = vld [vmem:[%s5105_s1 + $0x110] sm:$0xff]  ;;  %v3135_v62 = vld [vmem:[%s5105_s1 + $0x118] sm:$0xff]  ;;  %s4111_s9 = smul.u32 36, %s5120_s13 }
  0x13   : > { %s183_s19 = scalar_lea.vmem %s5104_s0, %s4110_s5  ;;  %v4022_v59 = vpack.c.bf16 %v3133_v54, %v3132_v53  ;;  %v3090_v0 = vld [vmem:[%s5105_s1 + $0xd0] sm:$0xff]  ;;  %v3091_v1 = vld [vmem:[%s5105_s1 + $0xd8] sm:$0xff]  ;;  %v4026_v4 = vpack.c.bf16 %v3135_v62, %v3134_v61  ;;  %v3136_v6 = vld [vmem:[%s5105_s1 + $0x120] sm:$0xff] }
  0x14   : > { %s4275_s20 = scalar_lea.vmem %s183_s19, %s194_s4  ;;  %v3137_v7 = vld [vmem:[%s5105_s1 + $0x128] sm:$0xff]  ;;  %v4010_v9 = vpack.c.bf16 %v3091_v1, %v3090_v0  ;;  %v3138_v16 = vld [vmem:[%s5105_s1 + $0x130] sm:$0xff]  ;;  %v3139_v17 = vld [vmem:[%s5105_s1 + $0x138] sm:$0xff] }
  0x15   : > { %v204_v11 = vld [vmem:[%s4275_s20 + $0x40] sm:$0xff]  ;;  %4108 = vmatpush3.bf16.msra.mxu1 %v3966_v8  ;;  %3969 = vmatpush3.bf16.msra.mxu0 %v3966_v8  ;;  %v205_v22 = vld [vmem:[%s4275_s20 + $0x48] sm:$0xff]  ;;  %v206_v24 = vld [vmem:[%s4275_s20 + $0x50] sm:$0xff]  ;;  %v4030_v14 = vpack.c.bf16 %v3137_v7, %v3136_v6 }
  0x16   : > { %3599 = vmatprep.mubr.msk.f32.mxu1 %vm222_vm0, %v204_v11  ;;  %v196_v15 = vld [vmem:[%s4275_s20] sm:$0xff]  ;;  %4105 = vmatprep.subr.bf16.mxu1 %v3970_v12  ;;  %v197_v23 = vld [vmem:[%s4275_s20 + $0x8] sm:$0xff]  ;;  %v198_v28 = vld [vmem:[%s4275_s20 + $0x10] sm:$0xff] }
  0x17   : > { %3587 = vmatprep.mubr.msk.f32.mxu0 %vm222_vm0, %v196_v15  ;;  %3971 = vmatprep.subr.bf16.mxu0 %v3970_v12  ;;  %v207_v31 = vld [vmem:[%s4275_s20 + $0x58] sm:$0xff]  ;;  %v208_v33 = vld [vmem:[%s4275_s20 + $0x60] sm:$0xff]  ;;  %v209_v41 = vld [vmem:[%s4275_s20 + $0x68] sm:$0xff] }
  0x18   : > { %v199_v32 = vld [vmem:[%s4275_s20 + $0x18] sm:$0xff]  ;;  %v200_v40 = vld [vmem:[%s4275_s20 + $0x20] sm:$0xff]  ;;  %v201_v42 = vld [vmem:[%s4275_s20 + $0x28] sm:$0xff] }
  0x19   : > { %4109 = vmatpush3.bf16.msra.mxu1 %v3970_v12  ;;  %3973 = vmatpush3.bf16.msra.mxu0 %v3970_v12  ;;  %v210_v43 = vld [vmem:[%s4275_s20 + $0x70] sm:$0xff]  ;;  %v211_v50 = vld [vmem:[%s4275_s20 + $0x78] sm:$0xff]  ;;  %v212_v55 = vld [vmem:[%s4275_s20 + $0x80] sm:$0xff] }
  0x1a   : > { %3975 = vmatprep.subr.bf16.mxu1 %v3974_v18  ;;  %3991 = vmatprep.subr.bf16.mxu0 %v3990_v19  ;;  %v202_v51 = vld [vmem:[%s4275_s20 + $0x30] sm:$0xff]  ;;  %v203_v52 = vld [vmem:[%s4275_s20 + $0x38] sm:$0xff]  ;;  %v3026_v58 = vld [vmem:[%s4275_s20 + $0x2] sm:$0xff] }
  0x1b   : > { %v213_v60 = vld [vmem:[%s4275_s20 + $0x88] sm:$0xff]  ;;  %v4390_v3 = vld [vmem:[%s4275_s20 + $0x12] sm:$0xff]  ;;  %v4405_v10 = vld [vmem:[%s4275_s20 + $0x1a] sm:$0xff] }
  0x1c   : > { %3600 = vmatmul.mubr.msk.f32.vlgmr.msra.gmra.mrb[0].mxu1 %vm222_vm0, %v205_v22  ;;  %3588 = vmatmul.mubr.msk.f32.vlgmr.msra.gmra.mrb[0].mxu0 %vm222_vm0, %v197_v23  ;;  %v2982_v63 = vld [vmem:[%s4275_s20 + $0x1] sm:$0xff]  ;;  %v3027_v2 = vld [vmem:[%s4275_s20 + $0xa] sm:$0xff]  ;;  %v2985_v15 = vld [vmem:[%s4275_s20 + $0x19] sm:$0xff] }
  0x1d   : > { %3977 = vmatpush3.bf16.msra.mxu1 %v3974_v18  ;;  %3602 = vmatprep.mubr.msk.f32.mxu1 %vm222_vm0, %v206_v24  ;;  %v2983_v5 = vld [vmem:[%s4275_s20 + $0x9] sm:$0xff]  ;;  %v2984_v8 = vld [vmem:[%s4275_s20 + $0x11] sm:$0xff]  ;;  %v3092_v11 = vld [vmem:[%s5105_s1 + $0xe0] sm:$0xff]  ;;  %v4034_v24 = vpack.c.bf16 %v3139_v17, %v3138_v16 }
  0x1e   : > { %3979 = vmatprep.subr.bf16.mxu1 %v3978_v25  ;;  %3590 = vmatprep.mubr.msk.f32.mxu0 %vm222_vm0, %v198_v28  ;;  %v3093_v12 = vld [vmem:[%s5105_s1 + $0xe8] sm:$0xff]  ;;  %v3094_v21 = vld [vmem:[%s5105_s1 + $0xf0] sm:$0xff]  ;;  %v3095_v22 = vld [vmem:[%s5105_s1 + $0xf8] sm:$0xff] }
  0x1f   : > { %3993 = vmatpush3.bf16.msra.mxu0 %v3990_v19  ;;  %v4415_v13 = vld [vmem:[%s4275_s20 + $0x22] sm:$0xff]  ;;  %v4014_v19 = vpack.c.bf16 %v3093_v12, %v3092_v11  ;;  %v4431_v20 = vld [vmem:[%s4275_s20 + $0x2a] sm:$0xff]  ;;  %v4441_v23 = vld [vmem:[%s4275_s20 + $0x32] sm:$0xff]  ;;  %v4018_v29 = vpack.c.bf16 %v3095_v22, %v3094_v21 }
  0x20   : > { %3603 = vmatmul.mubr.msk.f32.gmra.mrb[2].mxu1 %vm222_vm0, %v207_v31  ;;  %3591 = vmatmul.mubr.msk.f32.gmra.mrb[2].mxu0 %vm222_vm0, %v199_v32  ;;  %v2986_v18 = vld [vmem:[%s4275_s20 + $0x21] sm:$0xff]  ;;  %v2988_v28 = vld [vmem:[%s4275_s20 + $0x31] sm:$0xff]  ;;  %v2989_v35 = vld [vmem:[%s4275_s20 + $0x39] sm:$0xff] }
  0x21   : > { %3981 = vmatpush3.bf16.msra.mxu1 %v3978_v25  ;;  %3605 = vmatprep.mubr.msk.f32.mxu1 %vm222_vm0, %v208_v33  ;;  %v2987_v25 = vld [vmem:[%s4275_s20 + $0x29] sm:$0xff]  ;;  %v3220_v26 = vld [vmem:[%s5105_s1 + $0x180] sm:$0xff]  ;;  %v4485_v39 = vld [vmem:[%s4275_s20 + $0x52] sm:$0xff] }
  0x22   : > { %3983 = vmatprep.subr.bf16.mxu1 %v3982_v34  ;;  %3995 = vmatprep.subr.bf16.mxu0 %v3994_v36  ;;  %v3221_v27 = vld [vmem:[%s5105_s1 + $0x188] sm:$0xff]  ;;  %v4457_v30 = vld [vmem:[%s4275_s20 + $0x3a] sm:$0xff]  ;;  %v4515_v47 = vld [vmem:[%s4275_s20 + $0x72] sm:$0xff] }
  0x23   : > { %3593 = vmatprep.mubr.msk.f32.mxu0 %vm222_vm0, %v200_v40  ;;  %3997 = vmatpush3.bf16.msra.mxu0 %v3994_v36  ;;  %v3176_v31 = vld [vmem:[%s5105_s1 + $0x140] sm:$0xff]  ;;  %v3177_v32 = vld [vmem:[%s5105_s1 + $0x148] sm:$0xff]  ;;  %v2996_v49 = vld [vmem:[%s4275_s20 + $0x71] sm:$0xff] }
  0x24   : > { %3606 = vmatmul.mubr.msk.f32.gmra.mrb[4].mxu1 %vm222_vm0, %v209_v41  ;;  %3594 = vmatmul.mubr.msk.f32.gmra.mrb[4].mxu0 %vm222_vm0, %v201_v42  ;;  %v4467_v33 = vld [vmem:[%s4275_s20 + $0x42] sm:$0xff]  ;;  %v4476_v37 = vpack.c.bf16 %v3177_v32, %v3176_v31  ;;  %v4481_v38 = vld [vmem:[%s4275_s20 + $0x4a] sm:$0xff]  ;;  %v4497_v42 = vld [vmem:[%s4275_s20 + $0x5a] sm:$0xff] }
  0x25   : > { %3608 = vmatprep.mubr.msk.f32.mxu1 %vm222_vm0, %v210_v43  ;;  %3985 = vmatpush3.bf16.msra.mxu1 %v3982_v34  ;;  %v4469_v34 = vpack.c.bf16 %v3221_v27, %v3220_v26  ;;  %v2990_v36 = vld [vmem:[%s4275_s20 + $0x41] sm:$0xff]  ;;  %v2991_v40 = vld [vmem:[%s4275_s20 + $0x49] sm:$0xff]  ;;  %v2992_v41 = vld [vmem:[%s4275_s20 + $0x51] sm:$0xff] }
  0x26   : > { %3987 = vmatprep.subr.bf16.mxu1 %v3986_v44  ;;  %3999 = vmatprep.subr.bf16.mxu0 %v3998_v46  ;;  %v4501_v43 = vld [vmem:[%s4275_s20 + $0x62] sm:$0xff]  ;;  %v4539_v54 = vld [vmem:[%s4275_s20 + $0x8a] sm:$0xff]  ;;  %v3118_v6 = vld [vmem:[%s4275_s20 + $0x33] sm:$0xff] }
  0x27   : > { %3596 = vmatprep.mubr.msk.f32.mxu0 %vm222_vm0, %v202_v51  ;;  %4001 = vmatpush3.bf16.msra.mxu0 %v3998_v46  ;;  %v2994_v45 = vld [vmem:[%s4275_s20 + $0x61] sm:$0xff]  ;;  %v4511_v46 = vld [vmem:[%s4275_s20 + $0x6a] sm:$0xff]  ;;  %v3122_v22 = vld [vmem:[%s4275_s20 + $0x53] sm:$0xff] }
  0x28   : > { %3609 = vmatmul.mubr.msk.f32.gmra.mrb[6].mxu1 %vm222_vm0, %v211_v50  ;;  %3597 = vmatmul.mubr.msk.f32.gmra.mrb[6].mxu0 %vm222_vm0, %v203_v52  ;;  %v2995_v48 = vld [vmem:[%s4275_s20 + $0x69] sm:$0xff]  ;;  %v4525_v50 = vld [vmem:[%s4275_s20 + $0x7a] sm:$0xff] }
  0x29   : > { %3611 = vmatprep.mubr.msk.f32.mxu1 %vm222_vm0, %v212_v55  ;;  %3989 = vmatpush3.bf16.msra.mxu1 %v3986_v44  ;;  %v2993_v44 = vld [vmem:[%s4275_s20 + $0x59] sm:$0xff]  ;;  %v4529_v51 = vld [vmem:[%s4275_s20 + $0x82] sm:$0xff]  ;;  %v3182_v12 = vld [vmem:[%s5105_s1 + $0x170] sm:$0xff] }
  0x2a   : > { %4007 = vmatprep.subr.bf16.mxu1 %v4006_v56  ;;  %4003 = vmatprep.subr.bf16.mxu0 %v4002_v57  ;;  %v2997_v52 = vld [vmem:[%s4275_s20 + $0x79] sm:$0xff]  ;;  %v2998_v53 = vld [vmem:[%s4275_s20 + $0x81] sm:$0xff]  ;;  %v3125_v27 = vld [vmem:[%s4275_s20 + $0x6b] sm:$0xff] }
  0x2b   : > { %4005 = vmatpush3.bf16.msra.mxu0 %v4002_v57  ;;  %3673 = vmatprep.mubr.msk.f32.mxu0 %vm222_vm0, %v3026_v58  ;;  %v3114_v55 = vld [vmem:[%s4275_s20 + $0x13] sm:$0xff]  ;;  %v3115_v61 = vld [vmem:[%s4275_s20 + $0x1b] sm:$0xff]  ;;  %v3116_v62 = vld [vmem:[%s4275_s20 + $0x23] sm:$0xff] }
  0x2c   : > { %3612 = vmatmul.mubr.msk.f32.gmra.mrb[8].mxu1 %vm222_vm0, %v213_v60  ;;  %4023 = vmatprep.subr.bf16.mxu0 %v4022_v59  ;;  %v3222_v57 = vld [vmem:[%s5105_s1 + $0x190] sm:$0xff]  ;;  %v3223_v58 = vld [vmem:[%s5105_s1 + $0x198] sm:$0xff]  ;;  %v3224_v0 = vld [vmem:[%s5105_s1 + $0x1a0] sm:$0xff] }
  0x2d   : > { %3630 = vmatprep.mubr.msk.f32.mxu1 %vm222_vm0, %v2982_v63  ;;  %v3179_v60 = vld [vmem:[%s5105_s1 + $0x158] sm:$0xff]  ;;  %v4058_v63 = vpack.c.bf16 %v3223_v58, %v3222_v57  ;;  %v3225_v1 = vld [vmem:[%s5105_s1 + $0x1a8] sm:$0xff]  ;;  %v3308_v16 = vld [vmem:[%s5105_s1 + $0x200] sm:$0xff] }
  0x2e   : > { %3674 = vmatmul.mubr.msk.f32.vlgmr.msra.gmra.mrb[8].mxu0 %vm222_vm0, %v3027_v2  ;;  %v4062_v7 = vpack.c.bf16 %v3225_v1, %v3224_v0  ;;  %v3119_v11 = vld [vmem:[%s4275_s20 + $0x3b] sm:$0xff]  ;;  %v3309_v17 = vld [vmem:[%s5105_s1 + $0x208] sm:$0xff]  ;;  %v3130_v32 = vld [vmem:[%s4275_s20 + $0x93] sm:$0xff] }
  0x2f   : > { %4025 = vmatpush3.bf16.msra.mxu0 %v4022_v59  ;;  %3676 = vmatprep.mubr.msk.f32.mxu0 %vm222_vm0, %v4390_v3  ;;  %v3178_v59 = vld [vmem:[%s5105_s1 + $0x150] sm:$0xff]  ;;  %v3265_v21 = vld [vmem:[%s5105_s1 + $0x1c8] sm:$0xff]  ;;  %v3271_v58 = vld [vmem:[%s5105_s1 + $0x1f8] sm:$0xff] }
  0x30   : > { %3631 = vmatmul.mubr.msk.f32.vlgmr.msra.gmra.mrb[10].mxu1 %vm222_vm0, %v2983_v5  ;;  %4027 = vmatprep.subr.bf16.mxu0 %v4026_v4  ;;  %v4042_v2 = vpack.c.bf16 %v3179_v60, %v3178_v59  ;;  %v3181_v5 = vld [vmem:[%s5105_s1 + $0x168] sm:$0xff]  ;;  %v3270_v57 = vld [vmem:[%s5105_s1 + $0x1f0] sm:$0xff] }
  0x31   : > { %4009 = vmatpush3.bf16.msra.mxu1 %v4006_v56  ;;  %3633 = vmatprep.mubr.msk.f32.mxu1 %vm222_vm0, %v2984_v8  ;;  %v2999_v56 = vld [vmem:[%s4275_s20 + $0x89] sm:$0xff] }
  0x32   : > { %4011 = vmatprep.subr.bf16.mxu1 %v4010_v9  ;;  %3677 = vmatmul.mubr.msk.f32.gmra.mrb[10].mxu0 %vm222_vm0, %v4405_v10  ;;  %v3226_v8 = vld [vmem:[%s5105_s1 + $0x1b0] sm:$0xff]  ;;  %v3124_v26 = vld [vmem:[%s4275_s20 + $0x63] sm:$0xff] }
  0x33   : > { %3679 = vmatprep.mubr.msk.f32.mxu0 %vm222_vm0, %v4415_v13  ;;  %4029 = vmatpush3.bf16.msra.mxu0 %v4026_v4  ;;  %v3117_v4 = vld [vmem:[%s4275_s20 + $0x2b] sm:$0xff] }
  0x34   : > { %3634 = vmatmul.mubr.msk.f32.gmra.mrb[12].mxu1 %vm222_vm0, %v2985_v15  ;;  %4031 = vmatprep.subr.bf16.mxu0 %v4030_v14  ;;  %v3129_v31 = vld [vmem:[%s4275_s20 + $0x8b] sm:$0xff] }
  0x35   : > { %3636 = vmatprep.mubr.msk.f32.mxu1 %vm222_vm0, %v2986_v18  ;;  %4013 = vmatpush3.bf16.msra.mxu1 %v4010_v9  ;;  %v3227_v9 = vld [vmem:[%s5105_s1 + $0x1b8] sm:$0xff]  ;;  %v3165_v60 = vld [vmem:[%s4275_s20 + $0x4c] sm:$0xff]  ;;  %v3168_v0 = vld [vmem:[%s4275_s20 + $0x64] sm:$0xff] }
  0x36   : > { %3680 = vmatmul.mubr.msk.f32.gmra.mrb[12].mxu0 %vm222_vm0, %v4431_v20  ;;  %4015 = vmatprep.subr.bf16.mxu1 %v4014_v19  ;;  %v4066_v15 = vpack.c.bf16 %v3227_v9, %v3226_v8  ;;  %v3169_v1 = vld [vmem:[%s4275_s20 + $0x6c] sm:$0xff]  ;;  %v3175_v8 = vld [vmem:[%s4275_s20 + $0x9c] sm:$0xff] }
  0x37   : > { %3682 = vmatprep.mubr.msk.f32.mxu0 %vm222_vm0, %v4441_v23  ;;  %4033 = vmatpush3.bf16.msra.mxu0 %v4030_v14  ;;  %v3120_v14 = vld [vmem:[%s4275_s20 + $0x43] sm:$0xff]  ;;  %v3219_v9 = vld [vmem:[%s4275_s20 + $0xac] sm:$0xff] }
  0x38   : > { %3637 = vmatmul.mubr.msk.f32.gmra.mrb[14].mxu1 %vm222_vm0, %v2987_v25  ;;  %4035 = vmatprep.subr.bf16.mxu0 %v4034_v24  ;;  %v3123_v25 = vld [vmem:[%s4275_s20 + $0x5b] sm:$0xff] }
  0x39   : > { %3639 = vmatprep.mubr.msk.f32.mxu1 %vm222_vm0, %v2988_v28  ;;  %4017 = vmatpush3.bf16.msra.mxu1 %v4014_v19  ;;  %v3121_v19 = vld [vmem:[%s4275_s20 + $0x4b] sm:$0xff]  ;;  %v3126_v28 = vld [vmem:[%s4275_s20 + $0x73] sm:$0xff] }
  0x3a   : > { %3683 = vmatmul.mubr.msk.f32.gmra.mrb[14].mxu0 %vm222_vm0, %v4457_v30  ;;  %4019 = vmatprep.subr.bf16.mxu1 %v4018_v29 }
  0x3b   : > { %3685 = vmatprep.mubr.msk.f32.mxu0 %vm222_vm0, %v4467_v33  ;;  %4037 = vmatpush3.bf16.msra.mxu0 %v4034_v24 }
  0x3c   : > { %3640 = vmatmul.mubr.msk.f32.gmra.mrb[16].mxu1 %vm222_vm0, %v2989_v35  ;;  %4055 = vmatprep.subr.bf16.mxu0 %v4469_v34  ;;  %v3087_v35 = vld [vmem:[%s4275_s20 + $0x9a] sm:$0xff] }
  0x3d   : > { %3642 = vmatprep.mubr.msk.f32.mxu1 %vm222_vm0, %v2990_v36  ;;  %4021 = vmatpush3.bf16.msra.mxu1 %v4018_v29  ;;  %v3127_v29 = vld [vmem:[%s4275_s20 + $0x7b] sm:$0xff]  ;;  %v3310_v36 = vld [vmem:[%s5105_s1 + $0x210] sm:$0xff] }
  0x3e   : > { %3686 = vmatmul.mubr.msk.f32.gmra.mrb[16].mxu0 %vm222_vm0, %v4481_v38  ;;  %4039 = vmatprep.subr.bf16.mxu1 %v4476_v37 }
  0x3f   : > { %3688 = vmatprep.mubr.msk.f32.mxu0 %vm222_vm0, %v4485_v39 }
  0x40   : > { %3643 = vmatmul.mubr.msk.f32.gmra.mrb[18].mxu1 %vm222_vm0, %v2991_v40  ;;  %v3266_v40 = vld [vmem:[%s5105_s1 + $0x1d0] sm:$0xff] }
  0x41   : > { %3645 = vmatprep.mubr.msk.f32.mxu1 %vm222_vm0, %v2992_v41  ;;  %v3267_v41 = vld [vmem:[%s5105_s1 + $0x1d8] sm:$0xff] }
  0x42   : > { %3689 = vmatmul.mubr.msk.f32.gmra.mrb[18].mxu0 %vm222_vm0, %v4497_v42 }
  0x43   : > { %3691 = vmatprep.mubr.msk.f32.mxu0 %vm222_vm0, %v4501_v43 }
  0x44   : > { %3646 = vmatmul.mubr.msk.f32.gmra.mrb[20].mxu1 %vm222_vm0, %v2993_v44  ;;  %v3161_v44 = vld [vmem:[%s4275_s20 + $0x2c] sm:$0xff] }
  0x45   : > { %3648 = vmatprep.mubr.msk.f32.mxu1 %vm222_vm0, %v2994_v45  ;;  %v3312_v45 = vld [vmem:[%s5105_s1 + $0x220] sm:$0xff] }
  0x46   : > { %3692 = vmatmul.mubr.msk.f32.gmra.mrb[20].mxu0 %vm222_vm0, %v4511_v46 }
  0x47   : > { %3694 = vmatprep.mubr.msk.f32.mxu0 %vm222_vm0, %v4515_v47 }
  0x48   : > { %3649 = vmatmul.mubr.msk.f32.gmra.mrb[22].mxu1 %vm222_vm0, %v2995_v48  ;;  %v4074_v48 = vpack.c.bf16 %v3267_v41, %v3266_v40  ;;  %v3305_v40 = vld [vmem:[%s4275_s20 + $0x9e] sm:$0xff]  ;;  %v3306_v41 = vld [vmem:[%s4275_s20 + $0xa6] sm:$0xff] }
  0x49   : > { %3651 = vmatprep.mubr.msk.f32.mxu1 %vm222_vm0, %v2996_v49  ;;  %v3268_v49 = vld [vmem:[%s5105_s1 + $0x1e0] sm:$0xff] }
  0x4a   : > { %3695 = vmatmul.mubr.msk.f32.gmra.mrb[22].mxu0 %vm222_vm0, %v4525_v50 }
  0x4b   : > { %3697 = vmatprep.mubr.msk.f32.mxu0 %vm222_vm0, %v4529_v51 }
  0x4c   : > { %3652 = vmatmul.mubr.msk.f32.gmra.mrb[24].mxu1 %vm222_vm0, %v2997_v52  ;;  %v3163_v52 = vld [vmem:[%s4275_s20 + $0x3c] sm:$0xff] }
  0x4d   : > { %3654 = vmatprep.mubr.msk.f32.mxu1 %vm222_vm0, %v2998_v53  ;;  %v3314_v53 = vld [vmem:[%s5105_s1 + $0x230] sm:$0xff] }
  0x4e   : > { %3698 = vmatmul.mubr.msk.f32.gmra.mrb[24].mxu0 %vm222_vm0, %v4539_v54 }
  0x4f   : > { %3759 = vmatprep.mubr.msk.f32.mxu0 %vm222_vm0, %v3114_v55  ;;  %v3164_v55 = vld [vmem:[%s4275_s20 + $0x44] sm:$0xff] }
  0x50   : > { %3655 = vmatmul.mubr.msk.f32.gmra.mrb[26].mxu1 %vm222_vm0, %v2999_v56 }
  0x51   : > { %3716 = vmatprep.mubr.msk.f32.mxu1 %vm222_vm0, %v4390_v3  ;;  %v3180_v3 = vld [vmem:[%s5105_s1 + $0x160] sm:$0xff] }
  0x52   : > { %3760 = vmatmul.mubr.msk.f32.vlgmr.msra.gmra.mrb[26].mxu0 %vm222_vm0, %v3115_v61  ;;  %v3166_v61 = vld [vmem:[%s4275_s20 + $0x54] sm:$0xff] }
  0x53   : > { %4057 = vmatpush3.bf16.msra.mxu0 %v4469_v34  ;;  %3762 = vmatprep.mubr.msk.f32.mxu0 %vm222_vm0, %v3116_v62  ;;  %v3131_v34 = vld [vmem:[%s4275_s20 + $0x9b] sm:$0xff]  ;;  %v4082_v62 = vpack.c.bf16 %v3271_v58, %v3270_v57 }
  0x54   : > { %3717 = vmatmul.mubr.msk.f32.vlgmr.msra.gmra.mrb[28].mxu1 %vm222_vm0, %v4405_v10  ;;  %4059 = vmatprep.subr.bf16.mxu0 %v4058_v63  ;;  %v4046_v10 = vpack.c.bf16 %v3181_v5, %v3180_v3  ;;  %v3172_v3 = vld [vmem:[%s4275_s20 + $0x84] sm:$0xff]  ;;  %v3173_v5 = vld [vmem:[%s4275_s20 + $0x8c] sm:$0xff] }
  0x55   : > { %4041 = vmatpush3.bf16.msra.mxu1 %v4476_v37  ;;  %3719 = vmatprep.mubr.msk.f32.mxu1 %vm222_vm0, %v4415_v13  ;;  %v3183_v13 = vld [vmem:[%s5105_s1 + $0x178] sm:$0xff] }
  0x56   : > { %4043 = vmatprep.subr.bf16.mxu1 %v4042_v2  ;;  %3763 = vmatmul.mubr.msk.f32.gmra.mrb[28].mxu0 %vm222_vm0, %v3117_v4  ;;  %v4050_v18 = vpack.c.bf16 %v3183_v13, %v3182_v12  ;;  %v3311_v37 = vld [vmem:[%s5105_s1 + $0x218] sm:$0xff]  ;;  %v3291_v12 = vld [vmem:[%s4275_s20 + $0x2e] sm:$0xff] }
  0x57   : > { %3765 = vmatprep.mubr.msk.f32.mxu0 %vm222_vm0, %v3118_v6  ;;  %4061 = vmatpush3.bf16.msra.mxu0 %v4058_v63  ;;  %v3167_v63 = vld [vmem:[%s4275_s20 + $0x5c] sm:$0xff]  ;;  %v3174_v6 = vld [vmem:[%s4275_s20 + $0x94] sm:$0xff] }
  0x58   : > { %3720 = vmatmul.mubr.msk.f32.gmra.mrb[30].mxu1 %vm222_vm0, %v4431_v20  ;;  %4063 = vmatprep.subr.bf16.mxu0 %v4062_v7  ;;  %v3264_v20 = vld [vmem:[%s5105_s1 + $0x1c0] sm:$0xff]  ;;  %v3292_v13 = vld [vmem:[%s4275_s20 + $0x36] sm:$0xff] }
  0x59   : > { %3722 = vmatprep.mubr.msk.f32.mxu1 %vm222_vm0, %v4441_v23  ;;  %4045 = vmatpush3.bf16.msra.mxu1 %v4042_v2  ;;  %v4086_v23 = vpack.c.bf16 %v3309_v17, %v3308_v16  ;;  %v4070_v24 = vpack.c.bf16 %v3265_v21, %v3264_v20  ;;  %v3170_v2 = vld [vmem:[%s4275_s20 + $0x74] sm:$0xff]  ;;  %v3171_v4 = vld [vmem:[%s4275_s20 + $0x7c] sm:$0xff]  ;;  %v3294_v17 = vld [vmem:[%s4275_s20 + $0x46] sm:$0xff] }
  0x5a   : > { %3766 = vmatmul.mubr.msk.f32.gmra.mrb[30].mxu0 %vm222_vm0, %v3119_v11  ;;  %4047 = vmatprep.subr.bf16.mxu1 %v4046_v10  ;;  %v3246_v11 = vld [vmem:[%s4275_s20 + $0x25] sm:$0xff]  ;;  %v3295_v20 = vld [vmem:[%s4275_s20 + $0x4e] sm:$0xff]  ;;  %v3296_v21 = vld [vmem:[%s4275_s20 + $0x56] sm:$0xff] }
  0x5b   : > { %3768 = vmatprep.mubr.msk.f32.mxu0 %vm222_vm0, %v3120_v14  ;;  %4065 = vmatpush3.bf16.msra.mxu0 %v4062_v7  ;;  %v3218_v7 = vld [vmem:[%s4275_s20 + $0xa4] sm:$0xff]  ;;  %v3247_v14 = vld [vmem:[%s4275_s20 + $0x2d] sm:$0xff] }
  0x5c   : > { %3723 = vmatmul.mubr.msk.f32.gmra.mrb[32].mxu1 %vm222_vm0, %v4457_v30  ;;  %4067 = vmatprep.subr.bf16.mxu0 %v4066_v15  ;;  %v3128_v30 = vld [vmem:[%s4275_s20 + $0x83] sm:$0xff] }
  0x5d   : > { %3725 = vmatprep.mubr.msk.f32.mxu1 %vm222_vm0, %v4467_v33  ;;  %4049 = vmatpush3.bf16.msra.mxu1 %v4046_v10  ;;  %v3086_v33 = vld [vmem:[%s4275_s20 + $0x92] sm:$0xff]  ;;  %v3290_v10 = vld [vmem:[%s4275_s20 + $0x26] sm:$0xff]  ;;  %v3293_v16 = vld [vmem:[%s4275_s20 + $0x3e] sm:$0xff] }
  0x5e   : > { %3769 = vmatmul.mubr.msk.f32.gmra.mrb[32].mxu0 %vm222_vm0, %v3121_v19  ;;  %4051 = vmatprep.subr.bf16.mxu1 %v4050_v18  ;;  %v3250_v19 = vld [vmem:[%s4275_s20 + $0x45] sm:$0xff] }
  0x5f   : > { %3771 = vmatprep.mubr.msk.f32.mxu0 %vm222_vm0, %v3122_v22  ;;  %4069 = vmatpush3.bf16.msra.mxu0 %v4066_v15  ;;  %v3248_v15 = vld [vmem:[%s4275_s20 + $0x35] sm:$0xff]  ;;  %v3251_v22 = vld [vmem:[%s4275_s20 + $0x4d] sm:$0xff] }
  0x60   : > { %3726 = vmatmul.mubr.msk.f32.gmra.mrb[34].mxu1 %vm222_vm0, %v4481_v38  ;;  %4087 = vmatprep.subr.bf16.mxu0 %v4086_v23  ;;  %v3158_v38 = vld [vmem:[%s4275_s20 + $0x14] sm:$0xff] }
  0x61   : > { %3728 = vmatprep.mubr.msk.f32.mxu1 %vm222_vm0, %v4485_v39  ;;  %4053 = vmatpush3.bf16.msra.mxu1 %v4050_v18  ;;  %v3160_v39 = vld [vmem:[%s4275_s20 + $0x24] sm:$0xff] }
  0x62   : > { %3772 = vmatmul.mubr.msk.f32.gmra.mrb[34].mxu0 %vm222_vm0, %v3123_v25  ;;  %4071 = vmatprep.subr.bf16.mxu1 %v4070_v24  ;;  %v3249_v18 = vld [vmem:[%s4275_s20 + $0x3d] sm:$0xff]  ;;  %v3298_v25 = vld [vmem:[%s4275_s20 + $0x66] sm:$0xff] }
  0x63   : > { %3774 = vmatprep.mubr.msk.f32.mxu0 %vm222_vm0, %v3124_v26  ;;  %v3253_v26 = vld [vmem:[%s4275_s20 + $0x5d] sm:$0xff] }
  0x64   : > { %3729 = vmatmul.mubr.msk.f32.gmra.mrb[36].mxu1 %vm222_vm0, %v4497_v42  ;;  %v3159_v42 = vld [vmem:[%s4275_s20 + $0x1c] sm:$0xff] }
  0x65   : > { %3731 = vmatprep.mubr.msk.f32.mxu1 %vm222_vm0, %v4501_v43  ;;  %v4090_v43 = vpack.c.bf16 %v3311_v37, %v3310_v36  ;;  %v3303_v36 = vld [vmem:[%s4275_s20 + $0x8e] sm:$0xff]  ;;  %v3304_v37 = vld [vmem:[%s4275_s20 + $0x96] sm:$0xff] }
  0x66   : > { %3775 = vmatmul.mubr.msk.f32.gmra.mrb[36].mxu0 %vm222_vm0, %v3125_v27  ;;  %v3254_v27 = vld [vmem:[%s4275_s20 + $0x65] sm:$0xff] }
  0x67   : > { %3777 = vmatprep.mubr.msk.f32.mxu0 %vm222_vm0, %v3126_v28  ;;  %v3299_v28 = vld [vmem:[%s4275_s20 + $0x6e] sm:$0xff] }
  0x68   : > { %3732 = vmatmul.mubr.msk.f32.gmra.mrb[38].mxu1 %vm222_vm0, %v4511_v46  ;;  %v3313_v46 = vld [vmem:[%s5105_s1 + $0x228] sm:$0xff] }
  0x69   : > { %3734 = vmatprep.mubr.msk.f32.mxu1 %vm222_vm0, %v4515_v47  ;;  %v3162_v47 = vld [vmem:[%s4275_s20 + $0x34] sm:$0xff] }
  0x6a   : > { %3778 = vmatmul.mubr.msk.f32.gmra.mrb[38].mxu0 %vm222_vm0, %v3127_v29  ;;  %v3300_v29 = vld [vmem:[%s4275_s20 + $0x76] sm:$0xff] }
  0x6b   : > { %3780 = vmatprep.mubr.msk.f32.mxu0 %vm222_vm0, %v3128_v30  ;;  %v3255_v30 = vld [vmem:[%s4275_s20 + $0x6d] sm:$0xff] }
  0x6c   : > { %3735 = vmatmul.mubr.msk.f32.gmra.mrb[40].mxu1 %vm222_vm0, %v4525_v50  ;;  %v3269_v50 = vld [vmem:[%s5105_s1 + $0x1e8] sm:$0xff] }
  0x6d   : > { %3737 = vmatprep.mubr.msk.f32.mxu1 %vm222_vm0, %v4529_v51  ;;  %v4094_v51 = vpack.c.bf16 %v3313_v46, %v3312_v45  ;;  %v4078_v56 = vpack.c.bf16 %v3269_v50, %v3268_v49  ;;  %v3263_v45 = vld [vmem:[%s4275_s20 + $0xad] sm:$0xff] }
  0x6e   : > { %3781 = vmatmul.mubr.msk.f32.gmra.mrb[40].mxu0 %vm222_vm0, %v3129_v31  ;;  %v3256_v31 = vld [vmem:[%s4275_s20 + $0x75] sm:$0xff] }
  0x6f   : > { %3783 = vmatprep.mubr.msk.f32.mxu0 %vm222_vm0, %v3130_v32  ;;  %v3301_v32 = vld [vmem:[%s4275_s20 + $0x7e] sm:$0xff] }
  0x70   : > { %3738 = vmatmul.mubr.msk.f32.gmra.mrb[42].mxu1 %vm222_vm0, %v4539_v54  ;;  %v3315_v54 = vld [vmem:[%s5105_s1 + $0x238] sm:$0xff] }
  0x71   : > { %3740 = vmatprep.mubr.msk.f32.mxu1 %vm222_vm0, %v3086_v33  ;;  %v4098_v59 = vpack.c.bf16 %v3315_v54, %v3314_v53  ;;  %v3302_v33 = vld [vmem:[%s4275_s20 + $0x86] sm:$0xff] }
  0x72   : > { %3784 = vmatmul.mubr.msk.f32.gmra.mrb[42].mxu0 %vm222_vm0, %v3131_v34  ;;  %v3257_v34 = vld [vmem:[%s4275_s20 + $0x7d] sm:$0xff] }
  0x73   : > { %3845 = vmatprep.mubr.msk.f32.mxu0 %vm222_vm0, %v3160_v39 }
  0x74   : > { %3741 = vmatmul.mubr.msk.f32.gmra.mrb[44].mxu1 %vm222_vm0, %v3087_v35  ;;  %v3258_v35 = vld [vmem:[%s4275_s20 + $0x85] sm:$0xff] }
  0x75   : > { %3802 = vmatprep.mubr.msk.f32.mxu1 %vm222_vm0, %v3158_v38  ;;  %v3259_v38 = vld [vmem:[%s4275_s20 + $0x8d] sm:$0xff] }
  0x76   : > { %3846 = vmatmul.mubr.msk.f32.vlgmr.msra.gmra.mrb[44].mxu0 %vm222_vm0, %v3161_v44 }
  0x77   : > { %4089 = vmatpush3.bf16.msra.mxu0 %v4086_v23  ;;  %3848 = vmatprep.mubr.msk.f32.mxu0 %vm222_vm0, %v3162_v47  ;;  %v3252_v23 = vld [vmem:[%s4275_s20 + $0x55] sm:$0xff] }
  0x78   : > { %3803 = vmatmul.mubr.msk.f32.vlgmr.msra.gmra.mrb[46].mxu1 %vm222_vm0, %v3159_v42  ;;  %4091 = vmatprep.subr.bf16.mxu0 %v4090_v43  ;;  %v3261_v42 = vld [vmem:[%s4275_s20 + $0x9d] sm:$0xff] }
  0x79   : > { %4073 = vmatpush3.bf16.msra.mxu1 %v4070_v24  ;;  %3805 = vmatprep.mubr.msk.f32.mxu1 %vm222_vm0, %v3160_v39  ;;  %v3297_v24 = vld [vmem:[%s4275_s20 + $0x5e] sm:$0xff]  ;;  %v3260_v39 = vld [vmem:[%s4275_s20 + $0x95] sm:$0xff] }
  0x7a   : > { %4075 = vmatprep.subr.bf16.mxu1 %v4074_v48  ;;  %3849 = vmatmul.mubr.msk.f32.gmra.mrb[46].mxu0 %vm222_vm0, %v3163_v52 }
  0x7b   : > { %3851 = vmatprep.mubr.msk.f32.mxu0 %vm222_vm0, %v3164_v55  ;;  %4093 = vmatpush3.bf16.msra.mxu0 %v4090_v43  ;;  %v3262_v43 = vld [vmem:[%s4275_s20 + $0xa5] sm:$0xff] }
  0x7c   : > { %3806 = vmatmul.mubr.msk.f32.gmra.mrb[48].mxu1 %vm222_vm0, %v3161_v44  ;;  %4095 = vmatprep.subr.bf16.mxu0 %v4094_v51  ;;  %v3307_v44 = vld [vmem:[%s4275_s20 + $0xae] sm:$0xff]  ;;  %s184_s20 = smul.u32 18, %s4174_s12 }
  0x7d   : > { %3808 = vmatprep.mubr.msk.f32.mxu1 %vm222_vm0, %v3162_v47  ;;  %4077 = vmatpush3.bf16.msra.mxu1 %v4074_v48 }
  0x7e   : > { %3852 = vmatmul.mubr.msk.f32.gmra.mrb[48].mxu0 %vm222_vm0, %v3165_v60  ;;  %4079 = vmatprep.subr.bf16.mxu1 %v4078_v56  ;;  %p4962_p6 = scmp.lt.s32.totalorder %s184_s20, 35 }
  0x7f   : > { %3854 = vmatprep.mubr.msk.f32.mxu0 %vm222_vm0, %v3166_v61  ;;  %4097 = vmatpush3.bf16.msra.mxu0 %v4094_v51 }
  0x80   : > { %3809 = vmatmul.mubr.msk.f32.gmra.mrb[50].mxu1 %vm222_vm0, %v3163_v52  ;;  %4099 = vmatprep.subr.bf16.mxu0 %v4098_v59  ;;  %s5122_s20 = smov (!%p4962_p6, %s184_s20), 35 }
  0x81   : > { %3811 = vmatprep.mubr.msk.f32.mxu1 %vm222_vm0, %v3164_v55  ;;  %4081 = vmatpush3.bf16.msra.mxu1 %v4078_v56  ;;  %s190_s12 = sadd.s32 %s4111_s9, %s5122_s20 }
  0x82   : > { %3855 = vmatmul.mubr.msk.f32.gmra.mrb[50].mxu0 %vm222_vm0, %v3167_v63  ;;  %4083 = vmatprep.subr.bf16.mxu1 %v4082_v62  ;;  %s2963_s13 = sshll.u32 %s190_s12, 3 }
  0x83   : > { %3857 = vmatprep.mubr.msk.f32.mxu0 %vm222_vm0, %v3168_v0  ;;  %4101 = vmatpush3.bf16.msra.mxu0 %v4098_v59  ;;  %s5000_s22 = scalar_lea.vmem %s5107_s3, %s2963_s13 }
  0x84   : > { %3812 = vmatmul.mubr.msk.f32.gmra.mrb[52].mxu1 %vm222_vm0, %v3165_v60 }
  0x85   : > { %3814 = vmatprep.mubr.msk.f32.mxu1 %vm222_vm0, %v3166_v61  ;;  %4085 = vmatpush3.bf16.msra.mxu1 %v4082_v62 }
  0x86   : > { %3858 = vmatmul.mubr.msk.f32.gmra.mrb[52].mxu0 %vm222_vm0, %v3169_v1 }
  0x87   : > { %3860 = vmatprep.mubr.msk.f32.mxu0 %vm222_vm0, %v3170_v2 }
  0x88   : > { %3815 = vmatmul.mubr.msk.f32.gmra.mrb[54].mxu1 %vm222_vm0, %v3167_v63 }
  0x89   : > { %3817 = vmatprep.mubr.msk.f32.mxu1 %vm222_vm0, %v3168_v0 }
  0x8a   : > { %3861 = vmatmul.mubr.msk.f32.gmra.mrb[54].mxu0 %vm222_vm0, %v3171_v4 }
  0x8b   : > { %3863 = vmatprep.mubr.msk.f32.mxu0 %vm222_vm0, %v3172_v3 }
  0x8c   : > { %3818 = vmatmul.mubr.msk.f32.gmra.mrb[56].mxu1 %vm222_vm0, %v3169_v1 }
  0x8d   : > { %3820 = vmatprep.mubr.msk.f32.mxu1 %vm222_vm0, %v3170_v2 }
  0x8e   : > { %3864 = vmatmul.mubr.msk.f32.gmra.mrb[56].mxu0 %vm222_vm0, %v3173_v5 }
  0x8f   : > { %3866 = vmatprep.mubr.msk.f32.mxu0 %vm222_vm0, %v3174_v6 }
  0x90   : > { %3821 = vmatmul.mubr.msk.f32.gmra.mrb[58].mxu1 %vm222_vm0, %v3171_v4 }
  0x91   : > { %3823 = vmatprep.mubr.msk.f32.mxu1 %vm222_vm0, %v3172_v3 }
  0x92   : > { %3867 = vmatmul.mubr.msk.f32.gmra.mrb[58].mxu0 %vm222_vm0, %v3175_v8 }
  0x93   : > { %3869 = vmatprep.mubr.msk.f32.mxu0 %vm222_vm0, %v3218_v7 }
  0x94   : > { %3824 = vmatmul.mubr.msk.f32.gmra.mrb[60].mxu1 %vm222_vm0, %v3173_v5 }
  0x95   : > { %3826 = vmatprep.mubr.msk.f32.mxu1 %vm222_vm0, %v3174_v6 }
  0x96   : > { %3870 = vmatmul.mubr.msk.f32.gmra.mrb[60].mxu0 %vm222_vm0, %v3219_v9 }
  0x97   : > { %3931 = vmatprep.mubr.msk.f32.mxu0 %vm222_vm0, %v3290_v10 }
  0x98   : > { %3827 = vmatmul.mubr.msk.f32.gmra.mrb[62].mxu1 %vm222_vm0, %v3175_v8 }
  0x99   : > { %3888 = vmatprep.mubr.msk.f32.mxu1 %vm222_vm0, %v3246_v11 }
  0x9a   : > { %3932 = vmatmul.mubr.msk.f32.vlgmr.msra.gmra.mrb[62].mxu0 %vm222_vm0, %v3291_v12 }
  0x9b   : > { %3934 = vmatprep.mubr.msk.f32.mxu0 %vm222_vm0, %v3292_v13 }
  0x9c   : > { %3889 = vmatmul.mubr.msk.f32.vlgmr.msra.gmra.mrb[64].mxu1 %vm222_vm0, %v3247_v14 }
  0x9d   : > { %3891 = vmatprep.mubr.msk.f32.mxu1 %vm222_vm0, %v3248_v15 }
  0x9e   : > { %3935 = vmatmul.mubr.msk.f32.gmra.mrb[64].mxu0 %vm222_vm0, %v3293_v16 }
  0x9f   : > { %3937 = vmatprep.mubr.msk.f32.mxu0 %vm222_vm0, %v3294_v17 }
  0xa0   : > { %3892 = vmatmul.mubr.msk.f32.gmra.mrb[66].mxu1 %vm222_vm0, %v3249_v18 }
  0xa1   : > { %3894 = vmatprep.mubr.msk.f32.mxu1 %vm222_vm0, %v3250_v19 }
  0xa2   : > { %3938 = vmatmul.mubr.msk.f32.gmra.mrb[66].mxu0 %vm222_vm0, %v3295_v20 }
  0xa3   : > { %3940 = vmatprep.mubr.msk.f32.mxu0 %vm222_vm0, %v3296_v21 }
  0xa4   : > { %3895 = vmatmul.mubr.msk.f32.gmra.mrb[68].mxu1 %vm222_vm0, %v3251_v22 }
  0xa5   : > { %3897 = vmatprep.mubr.msk.f32.mxu1 %vm222_vm0, %v3252_v23 }
  0xa6   : > { %3941 = vmatmul.mubr.msk.f32.gmra.mrb[68].mxu0 %vm222_vm0, %v3297_v24 }
  0xa7   : > { %3943 = vmatprep.mubr.msk.f32.mxu0 %vm222_vm0, %v3298_v25 }
  0xa8   : > { %3898 = vmatmul.mubr.msk.f32.gmra.mrb[70].mxu1 %vm222_vm0, %v3253_v26 }
  0xa9   : > { %3900 = vmatprep.mubr.msk.f32.mxu1 %vm222_vm0, %v3254_v27 }
  0xaa   : > { %3944 = vmatmul.mubr.msk.f32.gmra.mrb[70].mxu0 %vm222_vm0, %v3299_v28 }
  0xab   : > { %3946 = vmatprep.mubr.msk.f32.mxu0 %vm222_vm0, %v3300_v29 }
  0xac   : > { %3901 = vmatmul.mubr.msk.f32.gmra.mrb[72].mxu1 %vm222_vm0, %v3255_v30 }
  0xad   : > { %3903 = vmatprep.mubr.msk.f32.mxu1 %vm222_vm0, %v3256_v31 }
  0xae   : > { %3947 = vmatmul.mubr.msk.f32.gmra.mrb[72].mxu0 %vm222_vm0, %v3301_v32 }
  0xaf   : > { %3949 = vmatprep.mubr.msk.f32.mxu0 %vm222_vm0, %v3302_v33 }
  0xb0   : > { %3904 = vmatmul.mubr.msk.f32.gmra.mrb[74].mxu1 %vm222_vm0, %v3257_v34 }
  0xb1   : > { %3906 = vmatprep.mubr.msk.f32.mxu1 %vm222_vm0, %v3258_v35 }
  0xb2   : > { %3950 = vmatmul.mubr.msk.f32.gmra.mrb[74].mxu0 %vm222_vm0, %v3303_v36 }
  0xb3   : > { %3952 = vmatprep.mubr.msk.f32.mxu0 %vm222_vm0, %v3304_v37 }
  0xb4   : > { %3907 = vmatmul.mubr.msk.f32.gmra.mrb[76].mxu1 %vm222_vm0, %v3259_v38 }
  0xb5   : > { %3909 = vmatprep.mubr.msk.f32.mxu1 %vm222_vm0, %v3260_v39 }
  0xb6   : > { %3953 = vmatmul.mubr.msk.f32.gmra.mrb[76].mxu0 %vm222_vm0, %v3305_v40 }
  0xb7   : > { %3955 = vmatprep.mubr.msk.f32.mxu0 %vm222_vm0, %v3306_v41 }
  0xb8   : > { %3910 = vmatmul.mubr.msk.f32.gmra.mrb[78].mxu1 %vm222_vm0, %v3261_v42 }
  0xb9   : > { %3912 = vmatprep.mubr.msk.f32.mxu1 %vm222_vm0, %v3262_v43 }
  0xba   : > { %3956 = vmatmul.mubr.msk.f32.gmra.mrb[78].mxu0 %vm222_vm0, %v3307_v44 }
  0xbc   : > { %3913 = vmatmul.mubr.msk.f32.gmra.mrb[80].mxu1 %vm222_vm0, %v3263_v45 }
  0xef   : > { %v3601_v46 = vpop.f32.mrb[0].mxu1  ;;  %v3589_v47 = vpop.f32.mrb[0].mxu0 }
  0xf0   : > { %441 = vst.msk [vmem:[#allocation2 + $0x48] sm:$0xff] %vm222_vm0, %v3601_v46  ;;  %v383_v48 = vpop.f32.mrb[1].mxu1  ;;  %433 = vst.msk [vmem:[#allocation2 + $0x8] sm:$0xff] %vm222_vm0, %v3589_v47  ;;  %v343_v49 = vpop.f32.mrb[1].mxu0 }
  0xf1   : > { %440 = vst.msk [vmem:[#allocation2 + $0x40] sm:$0xff] %vm222_vm0, %v383_v48  ;;  %432 = vst.msk [vmem:[#allocation2] sm:$0xff] %vm222_vm0, %v343_v49 }
  0xf3   : > { %v3604_v50 = vpop.f32.mrb[2].mxu1  ;;  %v3592_v51 = vpop.f32.mrb[2].mxu0 }
  0xf4   : > { %443 = vst.msk [vmem:[#allocation2 + $0x58] sm:$0xff] %vm222_vm0, %v3604_v50  ;;  %v393_v52 = vpop.f32.mrb[3].mxu1  ;;  %435 = vst.msk [vmem:[#allocation2 + $0x18] sm:$0xff] %vm222_vm0, %v3592_v51  ;;  %v353_v53 = vpop.f32.mrb[3].mxu0 }
  0xf5   : > { %442 = vst.msk [vmem:[#allocation2 + $0x50] sm:$0xff] %vm222_vm0, %v393_v52  ;;  %434 = vst.msk [vmem:[#allocation2 + $0x10] sm:$0xff] %vm222_vm0, %v353_v53 }
  0xf7   : > { %v3607_v54 = vpop.f32.mrb[4].mxu1  ;;  %v3595_v55 = vpop.f32.mrb[4].mxu0  ;;  %v689_v0 = vld [vmem:[#allocation2 + $0x8] sm:$0xff] }
  0xf8   : > { %445 = vst.msk [vmem:[#allocation2 + $0x68] sm:$0xff] %vm222_vm0, %v3607_v54  ;;  %v403_v56 = vpop.f32.mrb[5].mxu1  ;;  %437 = vst.msk [vmem:[#allocation2 + $0x28] sm:$0xff] %vm222_vm0, %v3595_v55  ;;  %v363_v57 = vpop.f32.mrb[5].mxu0  ;;  %v688_v2 = vld [vmem:[#allocation2] sm:$0xff]  ;;  %v697_v43 = vld [vmem:[#allocation2 + $0x48] sm:$0xff] }
  0xf9   : > { %444 = vst.msk [vmem:[#allocation2 + $0x60] sm:$0xff] %vm222_vm0, %v403_v56  ;;  %436 = vst.msk [vmem:[#allocation2 + $0x20] sm:$0xff] %vm222_vm0, %v363_v57  ;;  %v696_v46 = vld [vmem:[#allocation2 + $0x40] sm:$0xff] }
  0xfb   : > { %v3610_v58 = vpop.f32.mrb[6].mxu1  ;;  %v3598_v59 = vpop.f32.mrb[6].mxu0  ;;  %v691_v8 = vld [vmem:[#allocation2 + $0x18] sm:$0xff] }
  0xfc   : > { %447 = vst.msk [vmem:[#allocation2 + $0x78] sm:$0xff] %vm222_vm0, %v3610_v58  ;;  %v413_v60 = vpop.f32.mrb[7].mxu1  ;;  %439 = vst.msk [vmem:[#allocation2 + $0x38] sm:$0xff] %vm222_vm0, %v3598_v59  ;;  %v373_v61 = vpop.f32.mrb[7].mxu0  ;;  %v690_v10 = vld [vmem:[#allocation2 + $0x10] sm:$0xff]  ;;  %v699_v55 = vld [vmem:[#allocation2 + $0x58] sm:$0xff] }
  0xfd   : > { %446 = vst.msk [vmem:[#allocation2 + $0x70] sm:$0xff] %vm222_vm0, %v413_v60  ;;  %438 = vst.msk [vmem:[#allocation2 + $0x30] sm:$0xff] %vm222_vm0, %v373_v61  ;;  %v698_v58 = vld [vmem:[#allocation2 + $0x50] sm:$0xff] }
  0xff   : > { %v3613_v62 = vpop.f32.mrb[8].mxu1  ;;  %v693_v16 = vld [vmem:[#allocation2 + $0x28] sm:$0xff] }
 0x100   : > { %449 = vst.msk [vmem:[#allocation2 + $0x88] sm:$0xff] %vm222_vm0, %v3613_v62  ;;  %v423_v63 = vpop.f32.mrb[9].mxu1  ;;  %v692_v18 = vld [vmem:[#allocation2 + $0x20] sm:$0xff] }
 0x101   : > { %448 = vst.msk [vmem:[#allocation2 + $0x80] sm:$0xff] %vm222_vm0, %v423_v63  ;;  %v3675_v1 = vpop.f32.mrb[8].mxu0 }
 0x102   : > { %v891_v4 = vpop.f32.mrb[9].mxu0 }
 0x103   : > { %v3632_v3 = vpop.f32.mrb[10].mxu1  ;;  %v695_v25 = vld [vmem:[#allocation2 + $0x38] sm:$0xff] }
 0x104   : > { %v707_v5 = vadd.f32 %v3632_v3, %v689_v0  ;;  %v599_v6 = vpop.f32.mrb[11].mxu1  ;;  %v694_v29 = vld [vmem:[#allocation2 + $0x30] sm:$0xff] }
 0x105   : > { %v706_v7 = vadd.f32 %v688_v2, %v599_v6  ;;  %v3678_v9 = vpop.f32.mrb[10].mxu0  ;;  %v700_v6 = vld [vmem:[#allocation2 + $0x60] sm:$0xff] }
 0x106   : > { %725 = vst.msk [vmem:[#allocation2 + $0x8] sm:$0xff] %vm222_vm0, %v707_v5  ;;  %v901_v11 = vpop.f32.mrb[11].mxu0 }
 0x107   : > { %724 = vst.msk [vmem:[#allocation2] sm:$0xff] %vm222_vm0, %v706_v7  ;;  %v3635_v12 = vpop.f32.mrb[12].mxu1 }
 0x108   : > { %v709_v13 = vadd.f32 %v3635_v12, %v691_v8  ;;  %v609_v14 = vpop.f32.mrb[13].mxu1 }
 0x109   : > { %v708_v15 = vadd.f32 %v690_v10, %v609_v14  ;;  %v3681_v17 = vpop.f32.mrb[12].mxu0 }
 0x10a   : > { %727 = vst.msk [vmem:[#allocation2 + $0x18] sm:$0xff] %vm222_vm0, %v709_v13  ;;  %v911_v19 = vpop.f32.mrb[13].mxu0 }
 0x10b   : > { %726 = vst.msk [vmem:[#allocation2 + $0x10] sm:$0xff] %vm222_vm0, %v708_v15  ;;  %v3638_v20 = vpop.f32.mrb[14].mxu1  ;;  %v703_v15 = vld [vmem:[#allocation2 + $0x78] sm:$0xff] }
 0x10c   : > { %v711_v21 = vadd.f32 %v3638_v20, %v693_v16  ;;  %v619_v22 = vpop.f32.mrb[15].mxu1 }
 0x10d   : > { %v710_v23 = vadd.f32 %v692_v18, %v619_v22  ;;  %v981_v24 = vld [vmem:[#allocation2 + $0x8] sm:$0xff]  ;;  %v3684_v26 = vpop.f32.mrb[14].mxu0  ;;  %v702_v18 = vld [vmem:[#allocation2 + $0x70] sm:$0xff] }
 0x10e   : > { %729 = vst.msk [vmem:[#allocation2 + $0x28] sm:$0xff] %vm222_vm0, %v711_v21  ;;  %v999_v27 = vadd.f32 %v3675_v1, %v981_v24  ;;  %v980_v28 = vld [vmem:[#allocation2] sm:$0xff]  ;;  %v921_v30 = vpop.f32.mrb[15].mxu0 }
 0x10f   : > { %728 = vst.msk [vmem:[#allocation2 + $0x20] sm:$0xff] %vm222_vm0, %v710_v23  ;;  %v998_v31 = vadd.f32 %v980_v28, %v891_v4  ;;  %v3641_v32 = vpop.f32.mrb[16].mxu1  ;;  %v701_v4 = vld [vmem:[#allocation2 + $0x68] sm:$0xff] }
 0x110   : > { %1017 = vst.msk [vmem:[#allocation2 + $0x8] sm:$0xff] %vm222_vm0, %v999_v27  ;;  %v713_v33 = vadd.f32 %v3641_v32, %v695_v25  ;;  %v629_v34 = vpop.f32.mrb[17].mxu1  ;;  %v705_v27 = vld [vmem:[#allocation2 + $0x88] sm:$0xff] }
 0x111   : > { %1016 = vst.msk [vmem:[#allocation2] sm:$0xff] %vm222_vm0, %v998_v31  ;;  %v712_v35 = vadd.f32 %v694_v29, %v629_v34  ;;  %v983_v36 = vld [vmem:[#allocation2 + $0x18] sm:$0xff]  ;;  %v3687_v37 = vpop.f32.mrb[16].mxu0 }
 0x112   : > { %731 = vst.msk [vmem:[#allocation2 + $0x38] sm:$0xff] %vm222_vm0, %v713_v33  ;;  %v1001_v38 = vadd.f32 %v3678_v9, %v983_v36  ;;  %v982_v39 = vld [vmem:[#allocation2 + $0x10] sm:$0xff]  ;;  %v931_v40 = vpop.f32.mrb[17].mxu0 }
 0x113   : > { %730 = vst.msk [vmem:[#allocation2 + $0x30] sm:$0xff] %vm222_vm0, %v712_v35  ;;  %v1000_v41 = vadd.f32 %v982_v39, %v901_v11  ;;  %v3644_v42 = vpop.f32.mrb[18].mxu1 }
 0x114   : > { %1019 = vst.msk [vmem:[#allocation2 + $0x18] sm:$0xff] %vm222_vm0, %v1001_v38  ;;  %v715_v44 = vadd.f32 %v3644_v42, %v697_v43  ;;  %v639_v45 = vpop.f32.mrb[19].mxu1 }
 0x115   : > { %1018 = vst.msk [vmem:[#allocation2 + $0x10] sm:$0xff] %vm222_vm0, %v1000_v41  ;;  %v714_v47 = vadd.f32 %v696_v46, %v639_v45  ;;  %v985_v48 = vld [vmem:[#allocation2 + $0x28] sm:$0xff]  ;;  %v3690_v49 = vpop.f32.mrb[18].mxu0 }
 0x116   : > { %733 = vst.msk [vmem:[#allocation2 + $0x48] sm:$0xff] %vm222_vm0, %v715_v44  ;;  %v1003_v50 = vadd.f32 %v3681_v17, %v985_v48  ;;  %v984_v51 = vld [vmem:[#allocation2 + $0x20] sm:$0xff]  ;;  %v941_v52 = vpop.f32.mrb[19].mxu0 }
 0x117   : > { %732 = vst.msk [vmem:[#allocation2 + $0x40] sm:$0xff] %vm222_vm0, %v714_v47  ;;  %v1002_v53 = vadd.f32 %v984_v51, %v911_v19  ;;  %v3647_v54 = vpop.f32.mrb[20].mxu1  ;;  %v1273_v39 = vld [vmem:[#allocation2 + $0x8] sm:$0xff] }
 0x118   : > { %1021 = vst.msk [vmem:[#allocation2 + $0x28] sm:$0xff] %vm222_vm0, %v1003_v50  ;;  %v717_v56 = vadd.f32 %v3647_v54, %v699_v55  ;;  %v649_v57 = vpop.f32.mrb[21].mxu1  ;;  %v1272_v42 = vld [vmem:[#allocation2] sm:$0xff] }
 0x119   : > { %1020 = vst.msk [vmem:[#allocation2 + $0x20] sm:$0xff] %vm222_vm0, %v1002_v53  ;;  %v716_v59 = vadd.f32 %v698_v58, %v649_v57  ;;  %v987_v60 = vld [vmem:[#allocation2 + $0x38] sm:$0xff]  ;;  %v3693_v61 = vpop.f32.mrb[20].mxu0 }
 0x11a   : > { %735 = vst.msk [vmem:[#allocation2 + $0x58] sm:$0xff] %vm222_vm0, %v717_v56  ;;  %v1005_v62 = vadd.f32 %v3684_v26, %v987_v60  ;;  %v986_v63 = vld [vmem:[#allocation2 + $0x30] sm:$0xff]  ;;  %v951_v0 = vpop.f32.mrb[21].mxu0 }
 0x11b   : > { %734 = vst.msk [vmem:[#allocation2 + $0x50] sm:$0xff] %vm222_vm0, %v716_v59  ;;  %v1004_v1 = vadd.f32 %v986_v63, %v921_v30  ;;  %v3650_v2 = vpop.f32.mrb[22].mxu1  ;;  %v704_v30 = vld [vmem:[#allocation2 + $0x80] sm:$0xff]  ;;  %v1275_v51 = vld [vmem:[#allocation2 + $0x18] sm:$0xff] }
 0x11c   : > { %1023 = vst.msk [vmem:[#allocation2 + $0x38] sm:$0xff] %vm222_vm0, %v1005_v62  ;;  %v719_v3 = vadd.f32 %v3650_v2, %v701_v4  ;;  %v659_v5 = vpop.f32.mrb[23].mxu1  ;;  %v1274_v54 = vld [vmem:[#allocation2 + $0x10] sm:$0xff] }
 0x11d   : > { %1022 = vst.msk [vmem:[#allocation2 + $0x30] sm:$0xff] %vm222_vm0, %v1004_v1  ;;  %v718_v7 = vadd.f32 %v700_v6, %v659_v5  ;;  %v989_v8 = vld [vmem:[#allocation2 + $0x48] sm:$0xff]  ;;  %v3696_v9 = vpop.f32.mrb[22].mxu0 }
 0x11e   : > { %737 = vst.msk [vmem:[#allocation2 + $0x68] sm:$0xff] %vm222_vm0, %v719_v3  ;;  %v1007_v10 = vadd.f32 %v3687_v37, %v989_v8  ;;  %v988_v11 = vld [vmem:[#allocation2 + $0x40] sm:$0xff]  ;;  %v961_v12 = vpop.f32.mrb[23].mxu0 }
 0x11f   : > { %736 = vst.msk [vmem:[#allocation2 + $0x60] sm:$0xff] %vm222_vm0, %v718_v7  ;;  %v1006_v13 = vadd.f32 %v988_v11, %v931_v40  ;;  %v3653_v14 = vpop.f32.mrb[24].mxu1  ;;  %v1277_v63 = vld [vmem:[#allocation2 + $0x28] sm:$0xff] }
 0x120   : > { %1025 = vst.msk [vmem:[#allocation2 + $0x48] sm:$0xff] %vm222_vm0, %v1007_v10  ;;  %v721_v16 = vadd.f32 %v3653_v14, %v703_v15  ;;  %v669_v17 = vpop.f32.mrb[25].mxu1  ;;  %v1276_v2 = vld [vmem:[#allocation2 + $0x20] sm:$0xff] }
 0x121   : > { %1024 = vst.msk [vmem:[#allocation2 + $0x40] sm:$0xff] %vm222_vm0, %v1006_v13  ;;  %v720_v19 = vadd.f32 %v702_v18, %v669_v17  ;;  %v991_v20 = vld [vmem:[#allocation2 + $0x58] sm:$0xff]  ;;  %v3699_v21 = vpop.f32.mrb[24].mxu0 }
 0x122   : > { %739 = vst.msk [vmem:[#allocation2 + $0x78] sm:$0xff] %vm222_vm0, %v721_v16  ;;  %v1009_v22 = vadd.f32 %v3690_v49, %v991_v20  ;;  %v990_v23 = vld [vmem:[#allocation2 + $0x50] sm:$0xff]  ;;  %v971_v24 = vpop.f32.mrb[25].mxu0 }
 0x123   : > { %738 = vst.msk [vmem:[#allocation2 + $0x70] sm:$0xff] %vm222_vm0, %v720_v19  ;;  %v1008_v25 = vadd.f32 %v990_v23, %v941_v52  ;;  %v3656_v26 = vpop.f32.mrb[26].mxu1  ;;  %v1279_v11 = vld [vmem:[#allocation2 + $0x38] sm:$0xff] }
 0x124   : > { %1027 = vst.msk [vmem:[#allocation2 + $0x58] sm:$0xff] %vm222_vm0, %v1009_v22  ;;  %v723_v28 = vadd.f32 %v3656_v26, %v705_v27  ;;  %v679_v29 = vpop.f32.mrb[27].mxu1  ;;  %v1278_v14 = vld [vmem:[#allocation2 + $0x30] sm:$0xff] }
 0x125   : > { %1026 = vst.msk [vmem:[#allocation2 + $0x50] sm:$0xff] %vm222_vm0, %v1008_v25  ;;  %v722_v31 = vadd.f32 %v704_v30, %v679_v29  ;;  %v993_v32 = vld [vmem:[#allocation2 + $0x68] sm:$0xff]  ;;  %v3761_v33 = vpop.f32.mrb[26].mxu0 }
 0x126   : > { %741 = vst.msk [vmem:[#allocation2 + $0x88] sm:$0xff] %vm222_vm0, %v723_v28  ;;  %v1011_v34 = vadd.f32 %v3693_v61, %v993_v32  ;;  %v992_v35 = vld [vmem:[#allocation2 + $0x60] sm:$0xff]  ;;  %v1475_v36 = vpop.f32.mrb[27].mxu0 }
 0x127   : > { %740 = vst.msk [vmem:[#allocation2 + $0x80] sm:$0xff] %vm222_vm0, %v722_v31  ;;  %v1010_v37 = vadd.f32 %v992_v35, %v951_v0  ;;  %v3718_v38 = vpop.f32.mrb[28].mxu1  ;;  %v1281_v23 = vld [vmem:[#allocation2 + $0x48] sm:$0xff] }
 0x128   : > { %1029 = vst.msk [vmem:[#allocation2 + $0x68] sm:$0xff] %vm222_vm0, %v1011_v34  ;;  %v1291_v40 = vadd.f32 %v3718_v38, %v1273_v39  ;;  %v1183_v41 = vpop.f32.mrb[29].mxu1  ;;  %v1280_v26 = vld [vmem:[#allocation2 + $0x40] sm:$0xff] }
 0x129   : > { %1028 = vst.msk [vmem:[#allocation2 + $0x60] sm:$0xff] %vm222_vm0, %v1010_v37  ;;  %v1290_v43 = vadd.f32 %v1272_v42, %v1183_v41  ;;  %v995_v44 = vld [vmem:[#allocation2 + $0x78] sm:$0xff]  ;;  %v3764_v45 = vpop.f32.mrb[28].mxu0 }
 0x12a   : > { %1309 = vst.msk [vmem:[#allocation2 + $0x8] sm:$0xff] %vm222_vm0, %v1291_v40  ;;  %v1013_v46 = vadd.f32 %v3696_v9, %v995_v44  ;;  %v994_v47 = vld [vmem:[#allocation2 + $0x70] sm:$0xff]  ;;  %v1485_v48 = vpop.f32.mrb[29].mxu0 }
 0x12b   : > { %1308 = vst.msk [vmem:[#allocation2] sm:$0xff] %vm222_vm0, %v1290_v43  ;;  %v1012_v49 = vadd.f32 %v994_v47, %v961_v12  ;;  %v3721_v50 = vpop.f32.mrb[30].mxu1  ;;  %v1283_v35 = vld [vmem:[#allocation2 + $0x58] sm:$0xff] }
 0x12c   : > { %1031 = vst.msk [vmem:[#allocation2 + $0x78] sm:$0xff] %vm222_vm0, %v1013_v46  ;;  %v1293_v52 = vadd.f32 %v3721_v50, %v1275_v51  ;;  %v1193_v53 = vpop.f32.mrb[31].mxu1  ;;  %v1282_v38 = vld [vmem:[#allocation2 + $0x50] sm:$0xff] }
 0x12d   : > { %1030 = vst.msk [vmem:[#allocation2 + $0x70] sm:$0xff] %vm222_vm0, %v1012_v49  ;;  %v1292_v55 = vadd.f32 %v1274_v54, %v1193_v53  ;;  %v997_v56 = vld [vmem:[#allocation2 + $0x88] sm:$0xff]  ;;  %v3767_v57 = vpop.f32.mrb[30].mxu0 }
 0x12e   : > { %1311 = vst.msk [vmem:[#allocation2 + $0x18] sm:$0xff] %vm222_vm0, %v1293_v52  ;;  %v1015_v58 = vadd.f32 %v3699_v21, %v997_v56  ;;  %v996_v59 = vld [vmem:[#allocation2 + $0x80] sm:$0xff]  ;;  %v1495_v60 = vpop.f32.mrb[31].mxu0 }
 0x12f   : > { %1310 = vst.msk [vmem:[#allocation2 + $0x10] sm:$0xff] %vm222_vm0, %v1292_v55  ;;  %v1014_v61 = vadd.f32 %v996_v59, %v971_v24  ;;  %v3724_v62 = vpop.f32.mrb[32].mxu1  ;;  %v1285_v47 = vld [vmem:[#allocation2 + $0x68] sm:$0xff] }
 0x130   : > { %1033 = vst.msk [vmem:[#allocation2 + $0x88] sm:$0xff] %vm222_vm0, %v1015_v58  ;;  %v1295_v0 = vadd.f32 %v3724_v62, %v1277_v63  ;;  %v1203_v1 = vpop.f32.mrb[33].mxu1  ;;  %v1284_v50 = vld [vmem:[#allocation2 + $0x60] sm:$0xff] }
 0x131   : > { %1032 = vst.msk [vmem:[#allocation2 + $0x80] sm:$0xff] %vm222_vm0, %v1014_v61  ;;  %v1294_v4 = vadd.f32 %v1276_v2, %v1203_v1  ;;  %v1565_v3 = vld [vmem:[#allocation2 + $0x8] sm:$0xff]  ;;  %v3770_v5 = vpop.f32.mrb[32].mxu0 }
 0x132   : > { %1313 = vst.msk [vmem:[#allocation2 + $0x28] sm:$0xff] %vm222_vm0, %v1295_v0  ;;  %v1583_v6 = vadd.f32 %v3761_v33, %v1565_v3  ;;  %v1564_v7 = vld [vmem:[#allocation2] sm:$0xff]  ;;  %v1505_v8 = vpop.f32.mrb[33].mxu0 }
 0x133   : > { %1312 = vst.msk [vmem:[#allocation2 + $0x20] sm:$0xff] %vm222_vm0, %v1294_v4  ;;  %v1582_v9 = vadd.f32 %v1564_v7, %v1475_v36  ;;  %v3727_v10 = vpop.f32.mrb[34].mxu1  ;;  %v1287_v59 = vld [vmem:[#allocation2 + $0x78] sm:$0xff] }
 0x134   : > { %1601 = vst.msk [vmem:[#allocation2 + $0x8] sm:$0xff] %vm222_vm0, %v1583_v6  ;;  %v1297_v12 = vadd.f32 %v3727_v10, %v1279_v11  ;;  %v1213_v13 = vpop.f32.mrb[35].mxu1  ;;  %v1286_v62 = vld [vmem:[#allocation2 + $0x70] sm:$0xff] }
 0x135   : > { %1600 = vst.msk [vmem:[#allocation2] sm:$0xff] %vm222_vm0, %v1582_v9  ;;  %v1296_v15 = vadd.f32 %v1278_v14, %v1213_v13  ;;  %v1567_v16 = vld [vmem:[#allocation2 + $0x18] sm:$0xff]  ;;  %v3773_v17 = vpop.f32.mrb[34].mxu0 }
 0x136   : > { %1315 = vst.msk [vmem:[#allocation2 + $0x38] sm:$0xff] %vm222_vm0, %v1297_v12  ;;  %v1585_v18 = vadd.f32 %v3764_v45, %v1567_v16  ;;  %v1566_v19 = vld [vmem:[#allocation2 + $0x10] sm:$0xff]  ;;  %v1515_v20 = vpop.f32.mrb[35].mxu0 }
 0x137   : > { %1314 = vst.msk [vmem:[#allocation2 + $0x30] sm:$0xff] %vm222_vm0, %v1296_v15  ;;  %v1584_v21 = vadd.f32 %v1566_v19, %v1485_v48  ;;  %v3730_v22 = vpop.f32.mrb[36].mxu1  ;;  %v1289_v7 = vld [vmem:[#allocation2 + $0x88] sm:$0xff] }
 0x138   : > { %1603 = vst.msk [vmem:[#allocation2 + $0x18] sm:$0xff] %vm222_vm0, %v1585_v18  ;;  %v1299_v24 = vadd.f32 %v3730_v22, %v1281_v23  ;;  %v1223_v25 = vpop.f32.mrb[37].mxu1  ;;  %v1288_v10 = vld [vmem:[#allocation2 + $0x80] sm:$0xff] }
 0x139   : > { %1602 = vst.msk [vmem:[#allocation2 + $0x10] sm:$0xff] %vm222_vm0, %v1584_v21  ;;  %v1298_v27 = vadd.f32 %v1280_v26, %v1223_v25  ;;  %v1569_v28 = vld [vmem:[#allocation2 + $0x28] sm:$0xff]  ;;  %v3776_v29 = vpop.f32.mrb[36].mxu0 }
 0x13a   : > { %1317 = vst.msk [vmem:[#allocation2 + $0x48] sm:$0xff] %vm222_vm0, %v1299_v24  ;;  %v1587_v30 = vadd.f32 %v3767_v57, %v1569_v28  ;;  %v1568_v31 = vld [vmem:[#allocation2 + $0x20] sm:$0xff]  ;;  %v1525_v32 = vpop.f32.mrb[37].mxu0 }
 0x13b   : > { %1316 = vst.msk [vmem:[#allocation2 + $0x40] sm:$0xff] %vm222_vm0, %v1298_v27  ;;  %v1586_v33 = vadd.f32 %v1568_v31, %v1495_v60  ;;  %v3733_v34 = vpop.f32.mrb[38].mxu1  ;;  %v1857_v19 = vld [vmem:[#allocation2 + $0x8] sm:$0xff] }
 0x13c   : > { %1605 = vst.msk [vmem:[#allocation2 + $0x28] sm:$0xff] %vm222_vm0, %v1587_v30  ;;  %v1301_v36 = vadd.f32 %v3733_v34, %v1283_v35  ;;  %v1233_v37 = vpop.f32.mrb[39].mxu1  ;;  %v1856_v22 = vld [vmem:[#allocation2] sm:$0xff] }
 0x13d   : > { %1604 = vst.msk [vmem:[#allocation2 + $0x20] sm:$0xff] %vm222_vm0, %v1586_v33  ;;  %v1300_v39 = vadd.f32 %v1282_v38, %v1233_v37  ;;  %v1571_v40 = vld [vmem:[#allocation2 + $0x38] sm:$0xff]  ;;  %v3779_v41 = vpop.f32.mrb[38].mxu0 }
 0x13e   : > { %1319 = vst.msk [vmem:[#allocation2 + $0x58] sm:$0xff] %vm222_vm0, %v1301_v36  ;;  %v1589_v42 = vadd.f32 %v3770_v5, %v1571_v40  ;;  %v1570_v43 = vld [vmem:[#allocation2 + $0x30] sm:$0xff]  ;;  %v1535_v44 = vpop.f32.mrb[39].mxu0 }
 0x13f   : > { %1318 = vst.msk [vmem:[#allocation2 + $0x50] sm:$0xff] %vm222_vm0, %v1300_v39  ;;  %v1588_v45 = vadd.f32 %v1570_v43, %v1505_v8  ;;  %v3736_v46 = vpop.f32.mrb[40].mxu1  ;;  %v1859_v31 = vld [vmem:[#allocation2 + $0x18] sm:$0xff] }
 0x140   : > { %1607 = vst.msk [vmem:[#allocation2 + $0x38] sm:$0xff] %vm222_vm0, %v1589_v42  ;;  %v1303_v48 = vadd.f32 %v3736_v46, %v1285_v47  ;;  %v1243_v49 = vpop.f32.mrb[41].mxu1  ;;  %v1858_v34 = vld [vmem:[#allocation2 + $0x10] sm:$0xff] }
 0x141   : > { %1606 = vst.msk [vmem:[#allocation2 + $0x30] sm:$0xff] %vm222_vm0, %v1588_v45  ;;  %v1302_v51 = vadd.f32 %v1284_v50, %v1243_v49  ;;  %v1573_v52 = vld [vmem:[#allocation2 + $0x48] sm:$0xff]  ;;  %v3782_v53 = vpop.f32.mrb[40].mxu0 }
 0x142   : > { %1321 = vst.msk [vmem:[#allocation2 + $0x68] sm:$0xff] %vm222_vm0, %v1303_v48  ;;  %v1591_v54 = vadd.f32 %v3773_v17, %v1573_v52  ;;  %v1572_v55 = vld [vmem:[#allocation2 + $0x40] sm:$0xff]  ;;  %v1545_v56 = vpop.f32.mrb[41].mxu0 }
 0x143   : > { %1320 = vst.msk [vmem:[#allocation2 + $0x60] sm:$0xff] %vm222_vm0, %v1302_v51  ;;  %v1590_v57 = vadd.f32 %v1572_v55, %v1515_v20  ;;  %v3739_v58 = vpop.f32.mrb[42].mxu1  ;;  %v1861_v43 = vld [vmem:[#allocation2 + $0x28] sm:$0xff] }
 0x144   : > { %1609 = vst.msk [vmem:[#allocation2 + $0x48] sm:$0xff] %vm222_vm0, %v1591_v54  ;;  %v1305_v60 = vadd.f32 %v3739_v58, %v1287_v59  ;;  %v1253_v61 = vpop.f32.mrb[43].mxu1  ;;  %v1860_v46 = vld [vmem:[#allocation2 + $0x20] sm:$0xff] }
 0x145   : > { %1608 = vst.msk [vmem:[#allocation2 + $0x40] sm:$0xff] %vm222_vm0, %v1590_v57  ;;  %v1304_v63 = vadd.f32 %v1286_v62, %v1253_v61  ;;  %v1575_v0 = vld [vmem:[#allocation2 + $0x58] sm:$0xff]  ;;  %v3785_v1 = vpop.f32.mrb[42].mxu0 }
 0x146   : > { %1323 = vst.msk [vmem:[#allocation2 + $0x78] sm:$0xff] %vm222_vm0, %v1305_v60  ;;  %v1593_v2 = vadd.f32 %v3776_v29, %v1575_v0  ;;  %v1574_v4 = vld [vmem:[#allocation2 + $0x50] sm:$0xff]  ;;  %v1555_v3 = vpop.f32.mrb[43].mxu0 }
 0x147   : > { %1322 = vst.msk [vmem:[#allocation2 + $0x70] sm:$0xff] %vm222_vm0, %v1304_v63  ;;  %v1592_v5 = vadd.f32 %v1574_v4, %v1525_v32  ;;  %v3742_v6 = vpop.f32.mrb[44].mxu1  ;;  %v1863_v55 = vld [vmem:[#allocation2 + $0x38] sm:$0xff] }
 0x148   : > { %1611 = vst.msk [vmem:[#allocation2 + $0x58] sm:$0xff] %vm222_vm0, %v1593_v2  ;;  %v1307_v8 = vadd.f32 %v3742_v6, %v1289_v7  ;;  %v1263_v9 = vpop.f32.mrb[45].mxu1  ;;  %v1862_v58 = vld [vmem:[#allocation2 + $0x30] sm:$0xff] }
 0x149   : > { %1610 = vst.msk [vmem:[#allocation2 + $0x50] sm:$0xff] %vm222_vm0, %v1592_v5  ;;  %v1306_v11 = vadd.f32 %v1288_v10, %v1263_v9  ;;  %v1577_v12 = vld [vmem:[#allocation2 + $0x68] sm:$0xff]  ;;  %v3847_v13 = vpop.f32.mrb[44].mxu0 }
 0x14a   : > { %1325 = vst.msk [vmem:[#allocation2 + $0x88] sm:$0xff] %vm222_vm0, %v1307_v8  ;;  %v1595_v14 = vadd.f32 %v3779_v41, %v1577_v12  ;;  %v1576_v15 = vld [vmem:[#allocation2 + $0x60] sm:$0xff]  ;;  %v2059_v16 = vpop.f32.mrb[45].mxu0 }
 0x14b   : > { %1324 = vst.msk [vmem:[#allocation2 + $0x80] sm:$0xff] %vm222_vm0, %v1306_v11  ;;  %v1594_v17 = vadd.f32 %v1576_v15, %v1535_v44  ;;  %v3804_v18 = vpop.f32.mrb[46].mxu1  ;;  %v1865_v4 = vld [vmem:[#allocation2 + $0x48] sm:$0xff] }
 0x14c   : > { %1613 = vst.msk [vmem:[#allocation2 + $0x68] sm:$0xff] %vm222_vm0, %v1595_v14  ;;  %v1875_v20 = vadd.f32 %v3804_v18, %v1857_v19  ;;  %v1767_v21 = vpop.f32.mrb[47].mxu1  ;;  %v1864_v6 = vld [vmem:[#allocation2 + $0x40] sm:$0xff] }
 0x14d   : > { %1612 = vst.msk [vmem:[#allocation2 + $0x60] sm:$0xff] %vm222_vm0, %v1594_v17  ;;  %v1874_v23 = vadd.f32 %v1856_v22, %v1767_v21  ;;  %v1579_v24 = vld [vmem:[#allocation2 + $0x78] sm:$0xff]  ;;  %v3850_v25 = vpop.f32.mrb[46].mxu0 }
 0x14e   : > { %1893 = vst.msk [vmem:[#allocation2 + $0x8] sm:$0xff] %vm222_vm0, %v1875_v20  ;;  %v1597_v26 = vadd.f32 %v3782_v53, %v1579_v24  ;;  %v1578_v27 = vld [vmem:[#allocation2 + $0x70] sm:$0xff]  ;;  %v2069_v28 = vpop.f32.mrb[47].mxu0 }
 0x14f   : > { %1892 = vst.msk [vmem:[#allocation2] sm:$0xff] %vm222_vm0, %v1874_v23  ;;  %v1596_v29 = vadd.f32 %v1578_v27, %v1545_v56  ;;  %v3807_v30 = vpop.f32.mrb[48].mxu1  ;;  %v1867_v15 = vld [vmem:[#allocation2 + $0x58] sm:$0xff] }
 0x150   : > { %1615 = vst.msk [vmem:[#allocation2 + $0x78] sm:$0xff] %vm222_vm0, %v1597_v26  ;;  %v1877_v32 = vadd.f32 %v3807_v30, %v1859_v31  ;;  %v1777_v33 = vpop.f32.mrb[49].mxu1  ;;  %v1866_v18 = vld [vmem:[#allocation2 + $0x50] sm:$0xff] }
 0x151   : > { %1614 = vst.msk [vmem:[#allocation2 + $0x70] sm:$0xff] %vm222_vm0, %v1596_v29  ;;  %v1876_v35 = vadd.f32 %v1858_v34, %v1777_v33  ;;  %v1581_v36 = vld [vmem:[#allocation2 + $0x88] sm:$0xff]  ;;  %v3853_v37 = vpop.f32.mrb[48].mxu0 }
 0x152   : > { %1895 = vst.msk [vmem:[#allocation2 + $0x18] sm:$0xff] %vm222_vm0, %v1877_v32  ;;  %v1599_v38 = vadd.f32 %v3785_v1, %v1581_v36  ;;  %v1580_v39 = vld [vmem:[#allocation2 + $0x80] sm:$0xff]  ;;  %v2079_v40 = vpop.f32.mrb[49].mxu0 }
 0x153   : > { %1894 = vst.msk [vmem:[#allocation2 + $0x10] sm:$0xff] %vm222_vm0, %v1876_v35  ;;  %v1598_v41 = vadd.f32 %v1580_v39, %v1555_v3  ;;  %v3810_v42 = vpop.f32.mrb[50].mxu1  ;;  %v1869_v27 = vld [vmem:[#allocation2 + $0x68] sm:$0xff] }
 0x154   : > { %1617 = vst.msk [vmem:[#allocation2 + $0x88] sm:$0xff] %vm222_vm0, %v1599_v38  ;;  %v1879_v44 = vadd.f32 %v3810_v42, %v1861_v43  ;;  %v1787_v45 = vpop.f32.mrb[51].mxu1  ;;  %v1868_v30 = vld [vmem:[#allocation2 + $0x60] sm:$0xff] }
 0x155   : > { %1616 = vst.msk [vmem:[#allocation2 + $0x80] sm:$0xff] %vm222_vm0, %v1598_v41  ;;  %v1878_v47 = vadd.f32 %v1860_v46, %v1787_v45  ;;  %v2149_v48 = vld [vmem:[#allocation2 + $0x8] sm:$0xff]  ;;  %v3856_v49 = vpop.f32.mrb[50].mxu0 }
 0x156   : > { %1897 = vst.msk [vmem:[#allocation2 + $0x28] sm:$0xff] %vm222_vm0, %v1879_v44  ;;  %v2167_v50 = vadd.f32 %v3847_v13, %v2149_v48  ;;  %v2148_v51 = vld [vmem:[#allocation2] sm:$0xff]  ;;  %v2089_v52 = vpop.f32.mrb[51].mxu0 }
 0x157   : > { %1896 = vst.msk [vmem:[#allocation2 + $0x20] sm:$0xff] %vm222_vm0, %v1878_v47  ;;  %v2166_v53 = vadd.f32 %v2148_v51, %v2059_v16  ;;  %v3813_v54 = vpop.f32.mrb[52].mxu1  ;;  %v1871_v39 = vld [vmem:[#allocation2 + $0x78] sm:$0xff] }
 0x158   : > { %2185 = vst.msk [vmem:[#allocation2 + $0x8] sm:$0xff] %vm222_vm0, %v2167_v50  ;;  %v1881_v56 = vadd.f32 %v3813_v54, %v1863_v55  ;;  %v1797_v57 = vpop.f32.mrb[53].mxu1  ;;  %v1870_v42 = vld [vmem:[#allocation2 + $0x70] sm:$0xff] }
 0x159   : > { %2184 = vst.msk [vmem:[#allocation2] sm:$0xff] %vm222_vm0, %v2166_v53  ;;  %v1880_v59 = vadd.f32 %v1862_v58, %v1797_v57  ;;  %v2151_v60 = vld [vmem:[#allocation2 + $0x18] sm:$0xff]  ;;  %v3859_v61 = vpop.f32.mrb[52].mxu0 }
 0x15a   : > { %1899 = vst.msk [vmem:[#allocation2 + $0x38] sm:$0xff] %vm222_vm0, %v1881_v56  ;;  %v2169_v62 = vadd.f32 %v3850_v25, %v2151_v60  ;;  %v2150_v63 = vld [vmem:[#allocation2 + $0x10] sm:$0xff]  ;;  %v2099_v0 = vpop.f32.mrb[53].mxu0 }
 0x15b   : > { %1898 = vst.msk [vmem:[#allocation2 + $0x30] sm:$0xff] %vm222_vm0, %v1880_v59  ;;  %v2168_v1 = vadd.f32 %v2150_v63, %v2069_v28  ;;  %v3816_v2 = vpop.f32.mrb[54].mxu1  ;;  %v1873_v51 = vld [vmem:[#allocation2 + $0x88] sm:$0xff] }
 0x15c   : > { %2187 = vst.msk [vmem:[#allocation2 + $0x18] sm:$0xff] %vm222_vm0, %v2169_v62  ;;  %v1883_v3 = vadd.f32 %v3816_v2, %v1865_v4  ;;  %v1807_v5 = vpop.f32.mrb[55].mxu1  ;;  %v1872_v54 = vld [vmem:[#allocation2 + $0x80] sm:$0xff] }
 0x15d   : > { %2186 = vst.msk [vmem:[#allocation2 + $0x10] sm:$0xff] %vm222_vm0, %v2168_v1  ;;  %v1882_v7 = vadd.f32 %v1864_v6, %v1807_v5  ;;  %v2153_v8 = vld [vmem:[#allocation2 + $0x28] sm:$0xff]  ;;  %v3862_v9 = vpop.f32.mrb[54].mxu0 }
 0x15e   : > { %1901 = vst.msk [vmem:[#allocation2 + $0x48] sm:$0xff] %vm222_vm0, %v1883_v3  ;;  %v2171_v10 = vadd.f32 %v3853_v37, %v2153_v8  ;;  %v2152_v11 = vld [vmem:[#allocation2 + $0x20] sm:$0xff]  ;;  %v2109_v12 = vpop.f32.mrb[55].mxu0 }
 0x15f   : > { %1900 = vst.msk [vmem:[#allocation2 + $0x40] sm:$0xff] %vm222_vm0, %v1882_v7  ;;  %v2170_v13 = vadd.f32 %v2152_v11, %v2079_v40  ;;  %v3819_v14 = vpop.f32.mrb[56].mxu1  ;;  %v2441_v63 = vld [vmem:[#allocation2 + $0x8] sm:$0xff] }
 0x160   : > { %2189 = vst.msk [vmem:[#allocation2 + $0x28] sm:$0xff] %vm222_vm0, %v2171_v10  ;;  %v1885_v16 = vadd.f32 %v3819_v14, %v1867_v15  ;;  %v1817_v17 = vpop.f32.mrb[57].mxu1  ;;  %v2440_v2 = vld [vmem:[#allocation2] sm:$0xff] }
 0x161   : > { %2188 = vst.msk [vmem:[#allocation2 + $0x20] sm:$0xff] %vm222_vm0, %v2170_v13  ;;  %v1884_v19 = vadd.f32 %v1866_v18, %v1817_v17  ;;  %v2155_v20 = vld [vmem:[#allocation2 + $0x38] sm:$0xff]  ;;  %v3865_v21 = vpop.f32.mrb[56].mxu0 }
 0x162   : > { %1903 = vst.msk [vmem:[#allocation2 + $0x58] sm:$0xff] %vm222_vm0, %v1885_v16  ;;  %v2173_v22 = vadd.f32 %v3856_v49, %v2155_v20  ;;  %v2154_v23 = vld [vmem:[#allocation2 + $0x30] sm:$0xff]  ;;  %v2119_v24 = vpop.f32.mrb[57].mxu0 }
 0x163   : > { %1902 = vst.msk [vmem:[#allocation2 + $0x50] sm:$0xff] %vm222_vm0, %v1884_v19  ;;  %v2172_v25 = vadd.f32 %v2154_v23, %v2089_v52  ;;  %v3822_v26 = vpop.f32.mrb[58].mxu1  ;;  %v2443_v11 = vld [vmem:[#allocation2 + $0x18] sm:$0xff] }
 0x164   : > { %2191 = vst.msk [vmem:[#allocation2 + $0x38] sm:$0xff] %vm222_vm0, %v2173_v22  ;;  %v1887_v28 = vadd.f32 %v3822_v26, %v1869_v27  ;;  %v1827_v29 = vpop.f32.mrb[59].mxu1  ;;  %v2442_v14 = vld [vmem:[#allocation2 + $0x10] sm:$0xff] }
 0x165   : > { %2190 = vst.msk [vmem:[#allocation2 + $0x30] sm:$0xff] %vm222_vm0, %v2172_v25  ;;  %v1886_v31 = vadd.f32 %v1868_v30, %v1827_v29  ;;  %v2157_v32 = vld [vmem:[#allocation2 + $0x48] sm:$0xff]  ;;  %v3868_v33 = vpop.f32.mrb[58].mxu0 }
 0x166   : > { %1905 = vst.msk [vmem:[#allocation2 + $0x68] sm:$0xff] %vm222_vm0, %v1887_v28  ;;  %v2175_v34 = vadd.f32 %v3859_v61, %v2157_v32  ;;  %v2156_v35 = vld [vmem:[#allocation2 + $0x40] sm:$0xff]  ;;  %v2129_v36 = vpop.f32.mrb[59].mxu0 }
 0x167   : > { %1904 = vst.msk [vmem:[#allocation2 + $0x60] sm:$0xff] %vm222_vm0, %v1886_v31  ;;  %v2174_v37 = vadd.f32 %v2156_v35, %v2099_v0  ;;  %v3825_v38 = vpop.f32.mrb[60].mxu1  ;;  %v2445_v23 = vld [vmem:[#allocation2 + $0x28] sm:$0xff] }
 0x168   : > { %2193 = vst.msk [vmem:[#allocation2 + $0x48] sm:$0xff] %vm222_vm0, %v2175_v34  ;;  %v1889_v40 = vadd.f32 %v3825_v38, %v1871_v39  ;;  %v1837_v41 = vpop.f32.mrb[61].mxu1  ;;  %v2444_v26 = vld [vmem:[#allocation2 + $0x20] sm:$0xff] }
 0x169   : > { %2192 = vst.msk [vmem:[#allocation2 + $0x40] sm:$0xff] %vm222_vm0, %v2174_v37  ;;  %v1888_v43 = vadd.f32 %v1870_v42, %v1837_v41  ;;  %v2159_v44 = vld [vmem:[#allocation2 + $0x58] sm:$0xff]  ;;  %v3871_v45 = vpop.f32.mrb[60].mxu0 }
 0x16a   : > { %1907 = vst.msk [vmem:[#allocation2 + $0x78] sm:$0xff] %vm222_vm0, %v1889_v40  ;;  %v2177_v46 = vadd.f32 %v3862_v9, %v2159_v44  ;;  %v2158_v47 = vld [vmem:[#allocation2 + $0x50] sm:$0xff]  ;;  %v2139_v48 = vpop.f32.mrb[61].mxu0 }
 0x16b   : > { %1906 = vst.msk [vmem:[#allocation2 + $0x70] sm:$0xff] %vm222_vm0, %v1888_v43  ;;  %v2176_v49 = vadd.f32 %v2158_v47, %v2109_v12  ;;  %v3828_v50 = vpop.f32.mrb[62].mxu1  ;;  %v2447_v35 = vld [vmem:[#allocation2 + $0x38] sm:$0xff] }
 0x16c   : > { %2195 = vst.msk [vmem:[#allocation2 + $0x58] sm:$0xff] %vm222_vm0, %v2177_v46  ;;  %v1891_v52 = vadd.f32 %v3828_v50, %v1873_v51  ;;  %v1847_v53 = vpop.f32.mrb[63].mxu1  ;;  %v2446_v38 = vld [vmem:[#allocation2 + $0x30] sm:$0xff]  ;;  %v4989_v51 = vld [vmem:[%s5106_s2] ss:$0 sm:$0xff] }
 0x16d   : > { %2194 = vst.msk [vmem:[#allocation2 + $0x50] sm:$0xff] %vm222_vm0, %v2176_v49  ;;  %v1890_v55 = vadd.f32 %v1872_v54, %v1847_v53  ;;  %v2161_v56 = vld [vmem:[#allocation2 + $0x68] sm:$0xff]  ;;  %v3933_v57 = vpop.f32.mrb[62].mxu0 }
 0x16e   : > { %1909 = vst.msk [vmem:[#allocation2 + $0x88] sm:$0xff] %vm222_vm0, %v1891_v52  ;;  %v2179_v58 = vadd.f32 %v3865_v21, %v2161_v56  ;;  %v2160_v59 = vld [vmem:[#allocation2 + $0x60] sm:$0xff]  ;;  %v2643_v60 = vpop.f32.mrb[63].mxu0 }
 0x16f   : > { %1908 = vst.msk [vmem:[#allocation2 + $0x80] sm:$0xff] %vm222_vm0, %v1890_v55  ;;  %v2178_v61 = vadd.f32 %v2160_v59, %v2119_v24  ;;  %v3890_v62 = vpop.f32.mrb[64].mxu1  ;;  %v2449_v47 = vld [vmem:[#allocation2 + $0x48] sm:$0xff] }
 0x170   : > { %2197 = vst.msk [vmem:[#allocation2 + $0x68] sm:$0xff] %vm222_vm0, %v2179_v58  ;;  %v2459_v0 = vadd.f32 %v3890_v62, %v2441_v63  ;;  %v2351_v1 = vpop.f32.mrb[65].mxu1  ;;  %v2448_v50 = vld [vmem:[#allocation2 + $0x40] sm:$0xff] }
 0x171   : > { %2196 = vst.msk [vmem:[#allocation2 + $0x60] sm:$0xff] %vm222_vm0, %v2178_v61  ;;  %v2458_v4 = vadd.f32 %v2440_v2, %v2351_v1  ;;  %v2163_v3 = vld [vmem:[#allocation2 + $0x78] sm:$0xff]  ;;  %v3936_v5 = vpop.f32.mrb[64].mxu0 }
 0x172   : > { %2477 = vst.msk [vmem:[#allocation2 + $0x8] sm:$0xff] %vm222_vm0, %v2459_v0  ;;  %v2181_v6 = vadd.f32 %v3868_v33, %v2163_v3  ;;  %v2162_v7 = vld [vmem:[#allocation2 + $0x70] sm:$0xff]  ;;  %v2653_v8 = vpop.f32.mrb[65].mxu0 }
 0x173   : > { %2476 = vst.msk [vmem:[#allocation2] sm:$0xff] %vm222_vm0, %v2458_v4  ;;  %v2180_v9 = vadd.f32 %v2162_v7, %v2129_v36  ;;  %v3893_v10 = vpop.f32.mrb[66].mxu1  ;;  %v2451_v61 = vld [vmem:[#allocation2 + $0x58] sm:$0xff] }
 0x174   : > { %2199 = vst.msk [vmem:[#allocation2 + $0x78] sm:$0xff] %vm222_vm0, %v2181_v6  ;;  %v2461_v12 = vadd.f32 %v3893_v10, %v2443_v11  ;;  %v2361_v13 = vpop.f32.mrb[67].mxu1  ;;  %v2450_v2 = vld [vmem:[#allocation2 + $0x50] sm:$0xff] }
 0x175   : > { %2198 = vst.msk [vmem:[#allocation2 + $0x70] sm:$0xff] %vm222_vm0, %v2180_v9  ;;  %v2460_v15 = vadd.f32 %v2442_v14, %v2361_v13  ;;  %v2165_v16 = vld [vmem:[#allocation2 + $0x88] sm:$0xff]  ;;  %v3939_v17 = vpop.f32.mrb[66].mxu0 }
 0x176   : > { %2479 = vst.msk [vmem:[#allocation2 + $0x18] sm:$0xff] %vm222_vm0, %v2461_v12  ;;  %v2183_v18 = vadd.f32 %v3871_v45, %v2165_v16  ;;  %v2164_v19 = vld [vmem:[#allocation2 + $0x80] sm:$0xff]  ;;  %v2663_v20 = vpop.f32.mrb[67].mxu0 }
 0x177   : > { %2478 = vst.msk [vmem:[#allocation2 + $0x10] sm:$0xff] %vm222_vm0, %v2460_v15  ;;  %v2182_v21 = vadd.f32 %v2164_v19, %v2139_v48  ;;  %v3896_v22 = vpop.f32.mrb[68].mxu1  ;;  %v2453_v13 = vld [vmem:[#allocation2 + $0x68] sm:$0xff] }
 0x178   : > { %2201 = vst.msk [vmem:[#allocation2 + $0x88] sm:$0xff] %vm222_vm0, %v2183_v18  ;;  %v2463_v24 = vadd.f32 %v3896_v22, %v2445_v23  ;;  %v2371_v25 = vpop.f32.mrb[69].mxu1  ;;  %v2452_v18 = vld [vmem:[#allocation2 + $0x60] sm:$0xff] }
 0x179   : > { %2200 = vst.msk [vmem:[#allocation2 + $0x80] sm:$0xff] %vm222_vm0, %v2182_v21  ;;  %v2462_v27 = vadd.f32 %v2444_v26, %v2371_v25  ;;  %v2733_v28 = vld [vmem:[#allocation2 + $0x8] sm:$0xff]  ;;  %v3942_v29 = vpop.f32.mrb[68].mxu0 }
 0x17a   : > { %2481 = vst.msk [vmem:[#allocation2 + $0x28] sm:$0xff] %vm222_vm0, %v2463_v24  ;;  %v2751_v30 = vadd.f32 %v3933_v57, %v2733_v28  ;;  %v2732_v31 = vld [vmem:[#allocation2] sm:$0xff]  ;;  %v2673_v32 = vpop.f32.mrb[69].mxu0 }
 0x17b   : > { %2480 = vst.msk [vmem:[#allocation2 + $0x20] sm:$0xff] %vm222_vm0, %v2462_v27  ;;  %v2750_v33 = vadd.f32 %v2732_v31, %v2643_v60  ;;  %v3899_v34 = vpop.f32.mrb[70].mxu1 }
 0x17c   : > { %2769 = vst.msk [vmem:[#allocation2 + $0x8] sm:$0xff] %vm222_vm0, %v2751_v30  ;;  %v2465_v36 = vadd.f32 %v3899_v34, %v2447_v35  ;;  %v2381_v37 = vpop.f32.mrb[71].mxu1  ;;  %v2454_v34 = vld [vmem:[#allocation2 + $0x70] sm:$0xff] }
 0x17d   : > { %2768 = vst.msk [vmem:[#allocation2] sm:$0xff] %vm222_vm0, %v2750_v33  ;;  %v2464_v39 = vadd.f32 %v2446_v38, %v2381_v37  ;;  %v2735_v40 = vld [vmem:[#allocation2 + $0x18] sm:$0xff]  ;;  %v4979_v41 = vpop.f32.mrb[70].mxu0 }
 0x17e   : > { %2483 = vst.msk [vmem:[#allocation2 + $0x38] sm:$0xff] %vm222_vm0, %v2465_v36  ;;  %v2753_v42 = vadd.f32 %v3936_v5, %v2735_v40  ;;  %v2734_v43 = vld [vmem:[#allocation2 + $0x10] sm:$0xff]  ;;  %v4982_v44 = vpop.f32.mrb[71].mxu0 }
 0x17f   : > { %2482 = vst.msk [vmem:[#allocation2 + $0x30] sm:$0xff] %vm222_vm0, %v2464_v39  ;;  %v2752_v45 = vadd.f32 %v2734_v43, %v2653_v8  ;;  %v3902_v46 = vpop.f32.mrb[72].mxu1 }
 0x180   : > { %2771 = vst.msk [vmem:[#allocation2 + $0x18] sm:$0xff] %vm222_vm0, %v2753_v42  ;;  %v2467_v48 = vadd.f32 %v3902_v46, %v2449_v47  ;;  %v2391_v49 = vpop.f32.mrb[73].mxu1 }
 0x181   : > { %2770 = vst.msk [vmem:[#allocation2 + $0x10] sm:$0xff] %vm222_vm0, %v2752_v45  ;;  %v2466_v52 = vadd.f32 %v2448_v50, %v2391_v49  ;;  %v2737_v53 = vld [vmem:[#allocation2 + $0x28] sm:$0xff]  ;;  %v4992_v54 = vpop.f32.mrb[72].mxu0  ;;  %v2456_v50 = vld [vmem:[#allocation2 + $0x80] sm:$0xff] }
 0x182   : > { %2485 = vst.msk [vmem:[#allocation2 + $0x48] sm:$0xff] %vm222_vm0, %v2467_v48  ;;  %v2755_v55 = vadd.f32 %v3939_v17, %v2737_v53  ;;  %v2736_v56 = vld [vmem:[#allocation2 + $0x20] sm:$0xff]  ;;  %v4995_v57 = vpop.f32.mrb[73].mxu0  ;;  %v2457_v45 = vld [vmem:[#allocation2 + $0x88] sm:$0xff] }
 0x183   : > { %v2787_v58 = vld [vmem:[#allocation2 + $0x8] sm:$0xff]  ;;  %2484 = vst.msk [vmem:[#allocation2 + $0x40] sm:$0xff] %vm222_vm0, %v2466_v52  ;;  %v2754_v59 = vadd.f32 %v2736_v56, %v2663_v20  ;;  %v3905_v60 = vpop.f32.mrb[74].mxu1 }
 0x184   : > { %v2812_v62 = vadd.f32 %v4989_v51, %v2787_v58  ;;  %v2786_v63 = vld [vmem:[#allocation2] sm:$0xff]  ;;  %2773 = vst.msk [vmem:[#allocation2 + $0x28] sm:$0xff] %vm222_vm0, %v2755_v55  ;;  %v2469_v0 = vadd.f32 %v3905_v60, %v2451_v61  ;;  %v2401_v1 = vpop.f32.mrb[75].mxu1 }
 0x185   : > { %v2811_v4 = vadd.f32 %v4989_v51, %v2786_v63  ;;  %2772 = vst.msk [vmem:[#allocation2 + $0x20] sm:$0xff] %vm222_vm0, %v2754_v59  ;;  %v2468_v3 = vadd.f32 %v2450_v2, %v2401_v1  ;;  %v2739_v5 = vld [vmem:[#allocation2 + $0x38] sm:$0xff]  ;;  %v5007_v6 = vpop.f32.mrb[74].mxu0 }
 0x186   : > { %2830 = vst.msk [vmem:[%s5000_s22 + $0x8] sm:$0xff] %vm222_vm0, %v2812_v62  ;;  %2487 = vst.msk [vmem:[#allocation2 + $0x58] sm:$0xff] %vm222_vm0, %v2469_v0  ;;  %v2757_v7 = vadd.f32 %v3942_v29, %v2739_v5  ;;  %v2738_v8 = vld [vmem:[#allocation2 + $0x30] sm:$0xff]  ;;  %v5012_v9 = vpop.f32.mrb[75].mxu0  ;;  %v2455_v29 = vld [vmem:[#allocation2 + $0x78] sm:$0xff] }
 0x187   : > { %2829 = vst.msk [vmem:[%s5000_s22] sm:$0xff] %vm222_vm0, %v2811_v4  ;;  %v2789_v10 = vld [vmem:[#allocation2 + $0x18] sm:$0xff]  ;;  %2486 = vst.msk [vmem:[#allocation2 + $0x50] sm:$0xff] %vm222_vm0, %v2468_v3  ;;  %v2756_v11 = vadd.f32 %v2738_v8, %v2673_v32  ;;  %v3908_v12 = vpop.f32.mrb[76].mxu1 }
 0x188   : > { %v2814_v14 = vadd.f32 %v4989_v51, %v2789_v10  ;;  %v2788_v15 = vld [vmem:[#allocation2 + $0x10] sm:$0xff]  ;;  %2775 = vst.msk [vmem:[#allocation2 + $0x38] sm:$0xff] %vm222_vm0, %v2757_v7  ;;  %v2471_v16 = vadd.f32 %v3908_v12, %v2453_v13  ;;  %v2411_v17 = vpop.f32.mrb[77].mxu1 }
 0x189   : > { %v2813_v19 = vadd.f32 %v4989_v51, %v2788_v15  ;;  %2774 = vst.msk [vmem:[#allocation2 + $0x30] sm:$0xff] %vm222_vm0, %v2756_v11  ;;  %v2470_v20 = vadd.f32 %v2452_v18, %v2411_v17  ;;  %v2741_v21 = vld [vmem:[#allocation2 + $0x48] sm:$0xff]  ;;  %v3954_v22 = vpop.f32.mrb[76].mxu0 }
 0x18a   : > { %2832 = vst.msk [vmem:[%s5000_s22 + $0x18] sm:$0xff] %vm222_vm0, %v2814_v14  ;;  %2489 = vst.msk [vmem:[#allocation2 + $0x68] sm:$0xff] %vm222_vm0, %v2471_v16  ;;  %v2759_v23 = vadd.f32 %v4979_v41, %v2741_v21  ;;  %v2740_v24 = vld [vmem:[#allocation2 + $0x40] sm:$0xff]  ;;  %v2713_v25 = vpop.f32.mrb[77].mxu0 }
 0x18b   : > { %2831 = vst.msk [vmem:[%s5000_s22 + $0x10] sm:$0xff] %vm222_vm0, %v2813_v19  ;;  %v2791_v26 = vld [vmem:[#allocation2 + $0x28] sm:$0xff]  ;;  %2488 = vst.msk [vmem:[#allocation2 + $0x60] sm:$0xff] %vm222_vm0, %v2470_v20  ;;  %v2758_v27 = vadd.f32 %v2740_v24, %v4982_v44  ;;  %v3911_v28 = vpop.f32.mrb[78].mxu1 }
 0x18c   : > { %v2816_v30 = vadd.f32 %v4989_v51, %v2791_v26  ;;  %v2790_v31 = vld [vmem:[#allocation2 + $0x20] sm:$0xff]  ;;  %2777 = vst.msk [vmem:[#allocation2 + $0x48] sm:$0xff] %vm222_vm0, %v2759_v23  ;;  %v2473_v32 = vadd.f32 %v3911_v28, %v2455_v29  ;;  %v2421_v33 = vpop.f32.mrb[79].mxu1 }
 0x18d   : > { %v2815_v35 = vadd.f32 %v4989_v51, %v2790_v31  ;;  %2776 = vst.msk [vmem:[#allocation2 + $0x40] sm:$0xff] %vm222_vm0, %v2758_v27  ;;  %v2472_v36 = vadd.f32 %v2454_v34, %v2421_v33  ;;  %v2743_v37 = vld [vmem:[#allocation2 + $0x58] sm:$0xff]  ;;  %v3957_v38 = vpop.f32.mrb[78].mxu0 }
 0x18e   : > { %2834 = vst.msk [vmem:[%s5000_s22 + $0x28] sm:$0xff] %vm222_vm0, %v2816_v30  ;;  %2491 = vst.msk [vmem:[#allocation2 + $0x78] sm:$0xff] %vm222_vm0, %v2473_v32  ;;  %v2761_v39 = vadd.f32 %v4992_v54, %v2743_v37  ;;  %v2742_v40 = vld [vmem:[#allocation2 + $0x50] sm:$0xff]  ;;  %v2723_v41 = vpop.f32.mrb[79].mxu0 }
 0x18f   : > { %2833 = vst.msk [vmem:[%s5000_s22 + $0x20] sm:$0xff] %vm222_vm0, %v2815_v35  ;;  %v2793_v42 = vld [vmem:[#allocation2 + $0x38] sm:$0xff]  ;;  %2490 = vst.msk [vmem:[#allocation2 + $0x70] sm:$0xff] %vm222_vm0, %v2472_v36  ;;  %v2760_v43 = vadd.f32 %v2742_v40, %v4995_v57  ;;  %v3914_v44 = vpop.f32.mrb[80].mxu1 }
 0x190   : > { %v2818_v46 = vadd.f32 %v4989_v51, %v2793_v42  ;;  %v2792_v47 = vld [vmem:[#allocation2 + $0x30] sm:$0xff]  ;;  %2779 = vst.msk [vmem:[#allocation2 + $0x58] sm:$0xff] %vm222_vm0, %v2761_v39  ;;  %v2475_v48 = vadd.f32 %v3914_v44, %v2457_v45  ;;  %v2431_v49 = vpop.f32.mrb[81].mxu1 }
 0x191   : > { %v2817_v52 = vadd.f32 %v4989_v51, %v2792_v47  ;;  %2778 = vst.msk [vmem:[#allocation2 + $0x50] sm:$0xff] %vm222_vm0, %v2760_v43  ;;  %v2474_v53 = vadd.f32 %v2456_v50, %v2431_v49  ;;  %v2745_v54 = vld [vmem:[#allocation2 + $0x68] sm:$0xff] }
 0x192   : > { %2836 = vst.msk [vmem:[%s5000_s22 + $0x38] sm:$0xff] %vm222_vm0, %v2818_v46  ;;  %2493 = vst.msk [vmem:[#allocation2 + $0x88] sm:$0xff] %vm222_vm0, %v2475_v48  ;;  %v2763_v55 = vadd.f32 %v5007_v6, %v2745_v54  ;;  %v2744_v56 = vld [vmem:[#allocation2 + $0x60] sm:$0xff] }
 0x193   : > { %2835 = vst.msk [vmem:[%s5000_s22 + $0x30] sm:$0xff] %vm222_vm0, %v2817_v52  ;;  %v2795_v57 = vld [vmem:[#allocation2 + $0x48] sm:$0xff]  ;;  %2492 = vst.msk [vmem:[#allocation2 + $0x80] sm:$0xff] %vm222_vm0, %v2474_v53  ;;  %v2762_v58 = vadd.f32 %v2744_v56, %v5012_v9 }
 0x194   : > { %v2820_v59 = vadd.f32 %v4989_v51, %v2795_v57  ;;  %v2794_v60 = vld [vmem:[#allocation2 + $0x40] sm:$0xff]  ;;  %2781 = vst.msk [vmem:[#allocation2 + $0x68] sm:$0xff] %vm222_vm0, %v2763_v55 }
 0x195   : > { %v2819_v61 = vadd.f32 %v4989_v51, %v2794_v60  ;;  %2780 = vst.msk [vmem:[#allocation2 + $0x60] sm:$0xff] %vm222_vm0, %v2762_v58  ;;  %v2747_v62 = vld [vmem:[#allocation2 + $0x78] sm:$0xff] }
 0x196   : > { %2838 = vst.msk [vmem:[%s5000_s22 + $0x48] sm:$0xff] %vm222_vm0, %v2820_v59  ;;  %v2765_v63 = vadd.f32 %v3954_v22, %v2747_v62  ;;  %v2746_v0 = vld [vmem:[#allocation2 + $0x70] sm:$0xff] }
 0x197   : > { %2837 = vst.msk [vmem:[%s5000_s22 + $0x40] sm:$0xff] %vm222_vm0, %v2819_v61  ;;  %v2797_v1 = vld [vmem:[#allocation2 + $0x58] sm:$0xff]  ;;  %v2764_v2 = vadd.f32 %v2746_v0, %v2713_v25 }
 0x198   : > { %v2822_v4 = vadd.f32 %v4989_v51, %v2797_v1  ;;  %v2796_v3 = vld [vmem:[#allocation2 + $0x50] sm:$0xff]  ;;  %2783 = vst.msk [vmem:[#allocation2 + $0x78] sm:$0xff] %vm222_vm0, %v2765_v63 }
 0x199   : > { %v2821_v5 = vadd.f32 %v4989_v51, %v2796_v3  ;;  %2782 = vst.msk [vmem:[#allocation2 + $0x70] sm:$0xff] %vm222_vm0, %v2764_v2  ;;  %v2749_v6 = vld [vmem:[#allocation2 + $0x88] sm:$0xff] }
 0x19a   : > { %2840 = vst.msk [vmem:[%s5000_s22 + $0x58] sm:$0xff] %vm222_vm0, %v2822_v4  ;;  %v2767_v7 = vadd.f32 %v3957_v38, %v2749_v6  ;;  %v2748_v8 = vld [vmem:[#allocation2 + $0x80] sm:$0xff] }
 0x19b   : > { %2839 = vst.msk [vmem:[%s5000_s22 + $0x50] sm:$0xff] %vm222_vm0, %v2821_v5  ;;  %v2799_v9 = vld [vmem:[#allocation2 + $0x68] sm:$0xff]  ;;  %v2766_v10 = vadd.f32 %v2748_v8, %v2723_v41 }
 0x19c   : > { %v2824_v11 = vadd.f32 %v4989_v51, %v2799_v9  ;;  %v2798_v12 = vld [vmem:[#allocation2 + $0x60] sm:$0xff]  ;;  %2785 = vst.msk [vmem:[#allocation2 + $0x88] sm:$0xff] %vm222_vm0, %v2767_v7 }
 0x19d   : > { %v2823_v13 = vadd.f32 %v4989_v51, %v2798_v12  ;;  %2784 = vst.msk [vmem:[#allocation2 + $0x80] sm:$0xff] %vm222_vm0, %v2766_v10 }
 0x19e   : > { %2842 = vst.msk [vmem:[%s5000_s22 + $0x68] sm:$0xff] %vm222_vm0, %v2824_v11 }
 0x19f   : > { %2841 = vst.msk [vmem:[%s5000_s22 + $0x60] sm:$0xff] %vm222_vm0, %v2823_v13  ;;  %v2801_v14 = vld [vmem:[#allocation2 + $0x78] sm:$0xff] }
 0x1a0   : > { %v2826_v15 = vadd.f32 %v4989_v51, %v2801_v14  ;;  %v2800_v16 = vld [vmem:[#allocation2 + $0x70] sm:$0xff] }
 0x1a1   : > { %v2825_v17 = vadd.f32 %v4989_v51, %v2800_v16 }
 0x1a2   : > { %2844 = vst.msk [vmem:[%s5000_s22 + $0x78] sm:$0xff] %vm222_vm0, %v2826_v15 }
 0x1a3   : > { %2843 = vst.msk [vmem:[%s5000_s22 + $0x70] sm:$0xff] %vm222_vm0, %v2825_v17  ;;  %v2803_v18 = vld [vmem:[#allocation2 + $0x88] sm:$0xff] }
 0x1a4   : > { %v2828_v19 = vadd.f32 %v4989_v51, %v2803_v18  ;;  %v2802_v20 = vld [vmem:[#allocation2 + $0x80] sm:$0xff] }
 0x1a5   : > { %v2827_v21 = vadd.f32 %v4989_v51, %v2802_v20 }
 0x1a6   : > { %2846 = vst.msk [vmem:[%s5000_s22 + $0x88] sm:$0xff] %vm222_vm0, %v2828_v19 }
 0x1a7   : > { %2845 = vst.msk [vmem:[%s5000_s22 + $0x80] sm:$0xff] %vm222_vm0, %v2827_v21 }
 0x1a8 PF: > { %s13_s16 = sadd.s32 1, %s4190_s16   ;;  %s5109_s12 = smov %s4182_s14 }
 0x1a9   : > { %p10_p7 = scmp.ge.s32.totalorder %s13_s16, 6   ;;  %s5110_s13 = smov %s4186_s15 }
 0x1aa   : > { %s5111_s14 = smov %s5114_s17  ;;  %s5112_s15 = smov %s5118_s18 }
 0x1ab   :  { %12 = sbr.rel (!%p10_p7) target bundleno = 3 (0x3), region = 79 }

</bundles_post_ra>
